<compile_context>
chip_gen: v7x
topology: tpu7x:2x2x1
jax: 0.10.0
libtpu: 0.0.40
codegen_flags: <defaults>
</compile_context>

<pallas_src>
import functools

import jax
import jax.numpy as jnp
from jax.experimental import pallas as pl
from jax.experimental.pallas import tpu as pltpu


def _round_up(x, m):
    return (x + m - 1) // m * m


# ------------------------------ Pallas kernel --------------------------------

def _conv1x1_bn_relu_kernel(x_ref, w_ref, scale_ref, shift_ref, o_ref):
    # x: (TM, Cin) bf16, w: (Cin, Cout) bf16, scale/shift: (1, Cout) f32.
    acc = jnp.dot(x_ref[...], w_ref[...], preferred_element_type=jnp.float32)
    o_ref[...] = jnp.maximum(acc * scale_ref[...] + shift_ref[...], 0.0)


# -------------------------------- wrapper ------------------------------------

def conv1x1_bn_relu(x_nchw, w, b, gamma, beta, mean, var, *, eps=1e-5, tm=512):
    """relu(batchnorm(conv1x1(x))), fused and tiled over output rows."""
    N, Cin, H, W = x_nchw.shape
    Cout = w.shape[0]

    # NCHW -> NHWC -> (M, Cin): channels are the lane-dense (last) axis.
    x2d = jnp.transpose(x_nchw, (0, 2, 3, 1)).reshape(N * H * W, Cin)
    w_mat = jnp.transpose(w, (1, 0))                           # (Cin, Cout)

    M = N * H * W
    TM = min(tm, _round_up(M, 8))
    Mp = _round_up(M, TM)
    if Mp != M:
        x2d = jnp.pad(x2d, ((0, Mp - M), (0, 0)))

    # Fold BatchNorm (eval-mode running stats) and the conv bias into a single
    # per-channel affine applied in the matmul epilogue (all fp32).
    scale = gamma / jnp.sqrt(var + eps)                        # (Cout,)
    shift = (b - mean) * scale + beta                          # (Cout,)

    # bf16 MXU inputs, fp32 accumulation.
    x_bf = x2d.astype(jnp.bfloat16)
    w_bf = w_mat.astype(jnp.bfloat16)

    grid = (Mp // TM,)
    out = pl.pallas_call(
        _conv1x1_bn_relu_kernel,
        out_shape=jax.ShapeDtypeStruct((Mp, Cout), jnp.float32),
        grid=grid,
        in_specs=[
            pl.BlockSpec((TM, Cin), lambda i: (i, 0)),         # streamed row tile
            pl.BlockSpec((Cin, Cout), lambda i: (0, 0)),       # weight, resident
            pl.BlockSpec((1, Cout), lambda i: (0, 0)),         # bn scale
            pl.BlockSpec((1, Cout), lambda i: (0, 0)),         # bn shift (+bias)
        ],
        out_specs=pl.BlockSpec((TM, Cout), lambda i: (i, 0)),
        compiler_params=pltpu.CompilerParams(
            dimension_semantics=("parallel",),                 # shard M over TCs
            vmem_limit_bytes=32 * 1024 * 1024,                 # fits v5e/v6e/v7x
        ),
        cost_estimate=pl.CostEstimate(
            flops=2 * Mp * Cin * Cout,
            transcendentals=0,
            bytes_accessed=Mp * Cin * 2 + Cin * Cout * 2 + Mp * Cout * 4,
        ),
    )(x_bf, w_bf,
      scale.reshape(1, Cout).astype(jnp.float32),
      shift.reshape(1, Cout).astype(jnp.float32))

    out = out[:M].reshape(N, H, W, Cout)
    return jnp.transpose(out, (0, 3, 1, 2))                    # back to NCHW


# ----------------------------------- main -------------------------------------

if __name__ == "__main__":
    key = jax.random.PRNGKey(0)
    kx, kw, kb, kg, kbe, km, kv = jax.random.split(key, 7)

    # Small spatial/batch, but channel counts fixed by the module: 2048 -> 256.
    N, Cin, H, W = 2, 2048, 8, 8
    Cout = 256

    x = jax.random.normal(kx, (N, Cin, H, W), jnp.float32)
    w = jax.random.normal(kw, (Cout, Cin), jnp.float32) / jnp.sqrt(Cin)
    b = 0.01 * jax.random.normal(kb, (Cout,), jnp.float32)
    gamma = 1.0 + 0.1 * jax.random.normal(kg, (Cout,), jnp.float32)
    beta = 0.1 * jax.random.normal(kbe, (Cout,), jnp.float32)
    mean = 0.1 * jax.random.normal(km, (Cout,), jnp.float32)
    var = 1.0 + 0.1 * jax.random.uniform(kv, (Cout,), jnp.float32)

    fwd = jax.jit(conv1x1_bn_relu)
    y = fwd(x, w, b, gamma, beta, mean, var)
    jax.block_until_ready(y)

    # Pure-JAX fp32 reference of the same forward (conv1x1 + eval-mode BN + ReLU).
    def ref(x):
        x2d = jnp.transpose(x, (0, 2, 3, 1)).reshape(-1, Cin)
        z = jnp.dot(x2d, w.T, precision=jax.lax.Precision.HIGHEST) + b
        z = (z - mean) / jnp.sqrt(var + 1e-5) * gamma + beta
        z = jnp.maximum(z, 0.0)
        return jnp.transpose(z.reshape(N, H, W, Cout), (0, 3, 1, 2))

    want = jax.jit(ref)(x)
    jax.block_until_ready(want)

    assert y.shape == want.shape == (N, Cout, H, W), (y.shape, want.shape)
    max_err = float(jnp.max(jnp.abs(y - want)))
    # bf16 MXU inputs vs fp32 reference -> loose-but-meaningful tolerance.
    assert jnp.allclose(y, want, atol=5e-2, rtol=5e-2), max_err

    print("KERNEL_OK")
</pallas_src>

<mosaic_0001>
module attributes {stable_mosaic.version = 11 : i64} {
  func.func @_conv1x1_bn_relu_kernel(%arg0: i32, %arg1: memref<128x2048xbf16, #tpu.memory_space<vmem>>, %arg2: memref<2048x256xbf16, #tpu.memory_space<vmem>>, %arg3: memref<1x256xf32, #tpu.memory_space<vmem>>, %arg4: memref<1x256xf32, #tpu.memory_space<vmem>>, %arg5: memref<128x256xf32, #tpu.memory_space<vmem>>) attributes {dimension_semantics = [#tpu.dimension_semantics<parallel>], iteration_bounds = array<i64: 1>, scalar_prefetch = 0 : i64, scratch_operands = 0 : i64, tpu.core_type = #tpu.core_type<tc>, window_params = [{transform_indices = @transform_0, window_bounds = array<i64: 128, 2048>}, {pipeline_mode = #tpu.pipeline_mode<synchronous>, transform_indices = @transform_1, window_bounds = array<i64: 2048, 256>}, {pipeline_mode = #tpu.pipeline_mode<synchronous>, transform_indices = @transform_2, window_bounds = array<i64: 1, 256>}, {pipeline_mode = #tpu.pipeline_mode<synchronous>, transform_indices = @transform_3, window_bounds = array<i64: 1, 256>}, {transform_indices = @transform_4, window_bounds = array<i64: 128, 256>}]} {
    %c0 = arith.constant 0 : index
    %c0_0 = arith.constant 0 : index
    %0 = vector.load %arg1[%c0, %c0_0] : memref<128x2048xbf16, #tpu.memory_space<vmem>>, vector<128x2048xbf16>
    %c0_1 = arith.constant 0 : index
    %c0_2 = arith.constant 0 : index
    %1 = vector.load %arg2[%c0_1, %c0_2] : memref<2048x256xbf16, #tpu.memory_space<vmem>>, vector<2048x256xbf16>
    %cst = arith.constant dense<0.000000e+00> : vector<128x256xf32>
    %2 = tpu.matmul %0, %1, %cst {dimension_numbers = #tpu.dot_dimension_numbers<[1], [0], [0], [1], [0, 0, 1, 1], [], []>} : vector<128x2048xbf16>, vector<2048x256xbf16>, vector<128x256xf32> -> vector<128x256xf32>
    %c0_3 = arith.constant 0 : index
    %c0_4 = arith.constant 0 : index
    %3 = vector.load %arg3[%c0_3, %c0_4] : memref<1x256xf32, #tpu.memory_space<vmem>>, vector<1x256xf32>
    %4 = vector.broadcast %3 : vector<1x256xf32> to vector<128x256xf32>
    %5 = arith.mulf %2, %4 : vector<128x256xf32>
    %c0_5 = arith.constant 0 : index
    %c0_6 = arith.constant 0 : index
    %6 = vector.load %arg4[%c0_5, %c0_6] : memref<1x256xf32, #tpu.memory_space<vmem>>, vector<1x256xf32>
    %7 = vector.broadcast %6 : vector<1x256xf32> to vector<128x256xf32>
    %8 = arith.addf %5, %7 : vector<128x256xf32>
    %cst_7 = arith.constant 0.000000e+00 : f32
    %9 = vector.broadcast %cst_7 : f32 to vector<128x256xf32>
    %10 = arith.maximumf %8, %9 : vector<128x256xf32>
    %c0_8 = arith.constant 0 : index
    %c0_9 = arith.constant 0 : index
    %11 = vector.load %arg5[%c0_8, %c0_9] : memref<128x256xf32, #tpu.memory_space<vmem>>, vector<128x256xf32>
    tpu.vector_store %arg5[%c0_8, %c0_9], %10 {strides = array<i32>} : memref<128x256xf32, #tpu.memory_space<vmem>>, vector<128x256xf32>,
    return
  }
  func.func @transform_0(%arg0: i32) -> (i32, i32) {
    %c0_i32 = arith.constant 0 : i32
    %c0_i32_0 = arith.constant 0 : i32
    return %arg0, %c0_i32 : i32, i32
  }
  func.func @transform_1(%arg0: i32) -> (i32, i32) {
    %c0_i32 = arith.constant 0 : i32
    %c0_i32_0 = arith.constant 0 : i32
    %c0_i32_1 = arith.constant 0 : i32
    return %c0_i32, %c0_i32_0 : i32, i32
  }
  func.func @transform_2(%arg0: i32) -> (i32, i32) {
    %c0_i32 = arith.constant 0 : i32
    %c0_i32_0 = arith.constant 0 : i32
    %c0_i32_1 = arith.constant 0 : i32
    return %c0_i32, %c0_i32_0 : i32, i32
  }
  func.func @transform_3(%arg0: i32) -> (i32, i32) {
    %c0_i32 = arith.constant 0 : i32
    %c0_i32_0 = arith.constant 0 : i32
    %c0_i32_1 = arith.constant 0 : i32
    return %c0_i32, %c0_i32_0 : i32, i32
  }
  func.func @transform_4(%arg0: i32) -> (i32, i32) {
    %c0_i32 = arith.constant 0 : i32
    %c0_i32_0 = arith.constant 0 : i32
    return %arg0, %c0_i32 : i32, i32
  }
}

</mosaic_0001>

<bundles_post_ra>
// kernel: conv1x1_bn_relu.1
= control target key start
LH: loop header
LB: loop body
LE: loop exit
PB: predicated region body
PF: predicated region fallthrough
CT: control target
= control target key end

     0   :  { %s5683_s0 = inlined_call_operand.vmem [shape: bf16[128,2048], index: 0, kind: input, shape index: {}]   ;;  %s5684_s1 = inlined_call_operand.vmem [shape: bf16[2048,256], index: 1, kind: input, shape index: {}]   ;;  %s5685_s2 = inlined_call_operand.vmem [shape: f32[1,256], index: 2, kind: input, shape index: {}]   ;;  %s5686_s3 = inlined_call_operand.vmem [shape: f32[1,256], index: 3, kind: input, shape index: {}]   ;;  %s5687_s4 = inlined_call_operand.hbm [shape: f32[128,256], index: 4, kind: output, shape index: {}]  }
   0x1   :  { %v4005_v0 = vld [vmem:[%s5684_s1 + $0x4] ss:$8 sps:$4 sm:$0xff]   ;;  %v4009_v2 = vld [vmem:[%s5684_s1] ss:$8 sps:$4 sm:$0xff]   ;;  %v4011_v4 = vld [vmem:[%s5684_s1 + $0x14] ss:$8 sps:$4 sm:$0xff]  }
   0x2   :  { %v4007_v1 = vld [vmem:[%s5684_s1 + $0x404] ss:$8 sps:$4 sm:$0xff]   ;;  %2322 = vmatprep.subr.bf16.mxu1 %v4005_v0  ;;  %v4010_v3 = vld [vmem:[%s5684_s1 + $0x400] ss:$8 sps:$4 sm:$0xff]   ;;  %v4013_v5 = vld [vmem:[%s5684_s1 + $0x414] ss:$8 sps:$4 sm:$0xff]  }
   0x3   :  { %2774 = vmatprep.subr.bf16.mxu0 %v4007_v1  ;;  %2323 = vmatpush1.bf16.msra.mxu1 %v4009_v2  ;;  %v4015_v6 = vld [vmem:[%s5684_s1 + $0x10] ss:$8 sps:$4 sm:$0xff]   ;;  %v4017_v8 = vld [vmem:[%s5684_s1 + $0x24] ss:$8 sps:$4 sm:$0xff]   ;;  %v4021_v10 = vld [vmem:[%s5684_s1 + $0x20] ss:$8 sps:$4 sm:$0xff]  }
   0x4   :  { %2775 = vmatpush1.bf16.msra.mxu0 %v4010_v3  ;;  %2324 = vmatprep.subr.bf16.mxu1 %v4011_v4  ;;  %v4016_v7 = vld [vmem:[%s5684_s1 + $0x410] ss:$8 sps:$4 sm:$0xff]   ;;  %v4019_v9 = vld [vmem:[%s5684_s1 + $0x424] ss:$8 sps:$4 sm:$0xff]   ;;  %v4022_v11 = vld [vmem:[%s5684_s1 + $0x420] ss:$8 sps:$4 sm:$0xff]  }
   0x5   :  { %2776 = vmatprep.subr.bf16.mxu0 %v4013_v5  ;;  %v4023_v12 = vld [vmem:[%s5684_s1 + $0x34] ss:$8 sps:$4 sm:$0xff]   ;;  %v4027_v14 = vld [vmem:[%s5684_s1 + $0x30] ss:$8 sps:$4 sm:$0xff]   ;;  %v4029_v16 = vld [vmem:[%s5684_s1 + $0x44] ss:$8 sps:$4 sm:$0xff]  }
   0x6   :  { %v4025_v13 = vld [vmem:[%s5684_s1 + $0x434] ss:$8 sps:$4 sm:$0xff]   ;;  %v4028_v15 = vld [vmem:[%s5684_s1 + $0x430] ss:$8 sps:$4 sm:$0xff]   ;;  %v4031_v17 = vld [vmem:[%s5684_s1 + $0x444] ss:$8 sps:$4 sm:$0xff]  }
   0x7   :  { %2325 = vmatpush1.bf16.msra.mxu1 %v4015_v6  ;;  %v4033_v18 = vld [vmem:[%s5684_s1 + $0x40] ss:$8 sps:$4 sm:$0xff]   ;;  %v4035_v20 = vld [vmem:[%s5684_s1 + $0x54] ss:$8 sps:$4 sm:$0xff]   ;;  %v4039_v22 = vld [vmem:[%s5684_s1 + $0x50] ss:$8 sps:$4 sm:$0xff]  }
   0x8   :  { %2777 = vmatpush1.bf16.msra.mxu0 %v4016_v7  ;;  %2326 = vmatprep.subr.bf16.mxu1 %v4017_v8  ;;  %v4034_v19 = vld [vmem:[%s5684_s1 + $0x440] ss:$8 sps:$4 sm:$0xff]   ;;  %v4037_v21 = vld [vmem:[%s5684_s1 + $0x454] ss:$8 sps:$4 sm:$0xff]   ;;  %v4040_v23 = vld [vmem:[%s5684_s1 + $0x450] ss:$8 sps:$4 sm:$0xff]  }
   0x9   :  { %2778 = vmatprep.subr.bf16.mxu0 %v4019_v9  ;;  %v4041_v24 = vld [vmem:[%s5684_s1 + $0x64] ss:$8 sps:$4 sm:$0xff]   ;;  %v4045_v26 = vld [vmem:[%s5684_s1 + $0x60] ss:$8 sps:$4 sm:$0xff]   ;;  %v4047_v28 = vld [vmem:[%s5684_s1 + $0x74] ss:$8 sps:$4 sm:$0xff]  }
   0xa   :  { %v4043_v25 = vld [vmem:[%s5684_s1 + $0x464] ss:$8 sps:$4 sm:$0xff]   ;;  %v4046_v27 = vld [vmem:[%s5684_s1 + $0x460] ss:$8 sps:$4 sm:$0xff]   ;;  %v4049_v29 = vld [vmem:[%s5684_s1 + $0x474] ss:$8 sps:$4 sm:$0xff]  }
   0xb   :  { %2327 = vmatpush1.bf16.msra.mxu1 %v4021_v10  ;;  %v4051_v30 = vld [vmem:[%s5684_s1 + $0x70] ss:$8 sps:$4 sm:$0xff]   ;;  %v4053_v32 = vld [vmem:[%s5684_s1 + $0x84] ss:$8 sps:$4 sm:$0xff]   ;;  %v4057_v34 = vld [vmem:[%s5684_s1 + $0x80] ss:$8 sps:$4 sm:$0xff]  }
   0xc   :  { %2779 = vmatpush1.bf16.msra.mxu0 %v4022_v11  ;;  %2328 = vmatprep.subr.bf16.mxu1 %v4023_v12  ;;  %v4052_v31 = vld [vmem:[%s5684_s1 + $0x470] ss:$8 sps:$4 sm:$0xff]   ;;  %v4055_v33 = vld [vmem:[%s5684_s1 + $0x484] ss:$8 sps:$4 sm:$0xff]   ;;  %v4058_v35 = vld [vmem:[%s5684_s1 + $0x480] ss:$8 sps:$4 sm:$0xff]  }
   0xd   :  { %2780 = vmatprep.subr.bf16.mxu0 %v4025_v13  ;;  %v4059_v36 = vld [vmem:[%s5684_s1 + $0x94] ss:$8 sps:$4 sm:$0xff]   ;;  %v4063_v38 = vld [vmem:[%s5684_s1 + $0x90] ss:$8 sps:$4 sm:$0xff]   ;;  %v4065_v40 = vld [vmem:[%s5684_s1 + $0xa4] ss:$8 sps:$4 sm:$0xff]  }
   0xe   :  { %v4061_v37 = vld [vmem:[%s5684_s1 + $0x494] ss:$8 sps:$4 sm:$0xff]   ;;  %v4064_v39 = vld [vmem:[%s5684_s1 + $0x490] ss:$8 sps:$4 sm:$0xff]   ;;  %v4067_v41 = vld [vmem:[%s5684_s1 + $0x4a4] ss:$8 sps:$4 sm:$0xff]  }
   0xf   :  { %2329 = vmatpush1.bf16.msra.mxu1 %v4027_v14  ;;  %v4069_v42 = vld [vmem:[%s5684_s1 + $0xa0] ss:$8 sps:$4 sm:$0xff]   ;;  %v4071_v44 = vld [vmem:[%s5684_s1 + $0xb4] ss:$8 sps:$4 sm:$0xff]   ;;  %v4075_v46 = vld [vmem:[%s5684_s1 + $0xb0] ss:$8 sps:$4 sm:$0xff]  }
  0x10   :  { %2781 = vmatpush1.bf16.msra.mxu0 %v4028_v15  ;;  %2330 = vmatprep.subr.bf16.mxu1 %v4029_v16  ;;  %v4070_v43 = vld [vmem:[%s5684_s1 + $0x4a0] ss:$8 sps:$4 sm:$0xff]   ;;  %v4073_v45 = vld [vmem:[%s5684_s1 + $0x4b4] ss:$8 sps:$4 sm:$0xff]   ;;  %v4076_v47 = vld [vmem:[%s5684_s1 + $0x4b0] ss:$8 sps:$4 sm:$0xff]  }
  0x11   :  { %2782 = vmatprep.subr.bf16.mxu0 %v4031_v17  ;;  %v18_v48 = vld [vmem:[%s5683_s0] sm:$0xff]  ;;  %v4083_v58 = vld [vmem:[%s5684_s1 + $0xd4] ss:$8 sps:$4 sm:$0xff]   ;;  %v4087_v60 = vld [vmem:[%s5684_s1 + $0xd0] ss:$8 sps:$4 sm:$0xff]  }
  0x12   :  { %v26_v49 = vld [vmem:[%s5683_s0 + $0x40] sm:$0xff]  ;;  %v4085_v59 = vld [vmem:[%s5684_s1 + $0x4d4] ss:$8 sps:$4 sm:$0xff]   ;;  %v4088_v61 = vld [vmem:[%s5684_s1 + $0x4d0] ss:$8 sps:$4 sm:$0xff]  }
  0x13   :  { %2331 = vmatpush1.bf16.msra.mxu1 %v4033_v18  ;;  %v22_v50 = vld [vmem:[%s5683_s0 + $0x20] sm:$0xff]  ;;  %v3395_v53 = vcombine.high %v18_v48, %v26_v49  ;;  %v4095_v2 = vld [vmem:[%s5684_s1 + $0xf4] ss:$8 sps:$4 sm:$0xff]   ;;  %v4099_v4 = vld [vmem:[%s5684_s1 + $0xf0] ss:$8 sps:$4 sm:$0xff]   ;;  %v3394_v11 = vcombine.low %v18_v48, %v26_v49 }
  0x14   :  { %2783 = vmatpush1.bf16.msra.mxu0 %v4034_v19  ;;  %2332 = vmatprep.subr.bf16.mxu1 %v4035_v20  ;;  %v30_v51 = vld [vmem:[%s5683_s0 + $0x60] sm:$0xff]  ;;  %v4097_v3 = vld [vmem:[%s5684_s1 + $0x4f4] ss:$8 sps:$4 sm:$0xff]   ;;  %v4100_v5 = vld [vmem:[%s5684_s1 + $0x4f0] ss:$8 sps:$4 sm:$0xff]  }
  0x15   :  { %2784 = vmatprep.subr.bf16.mxu0 %v4037_v21  ;;  %v4077_v52 = vld [vmem:[%s5684_s1 + $0xc4] ss:$8 sps:$4 sm:$0xff]   ;;  %v3403_v55 = vcombine.high %v22_v50, %v30_v51  ;;  %2354 = vmatprep.mubr.bf16.mxu1 %v3395_v53  ;;  %v4081_v56 = vld [vmem:[%s5684_s1 + $0xc0] ss:$8 sps:$4 sm:$0xff]   ;;  %v3402_v12 = vcombine.low %v22_v50, %v30_v51  ;;  %v4109_v16 = vld [vmem:[%s5684_s1 + $0x114] ss:$8 sps:$4 sm:$0xff]  }
  0x16   :  { %v4079_v54 = vld [vmem:[%s5684_s1 + $0x4c4] ss:$8 sps:$4 sm:$0xff]   ;;  %v4082_v57 = vld [vmem:[%s5684_s1 + $0x4c0] ss:$8 sps:$4 sm:$0xff]   ;;  %v4112_v17 = vld [vmem:[%s5684_s1 + $0x514] ss:$8 sps:$4 sm:$0xff]  }
  0x17   :  { %2333 = vmatpush1.bf16.msra.mxu1 %v4039_v22  ;;  %2806 = vmatprep.mubr.bf16.mxu0 %v3403_v55  ;;  %v4089_v62 = vld [vmem:[%s5684_s1 + $0xe4] ss:$8 sps:$4 sm:$0xff]   ;;  %v4093_v0 = vld [vmem:[%s5684_s1 + $0xe0] ss:$8 sps:$4 sm:$0xff]   ;;  %v4107_v20 = vld [vmem:[%s5684_s1 + $0x110] ss:$8 sps:$4 sm:$0xff]  }
  0x18   :  { %2785 = vmatpush1.bf16.msra.mxu0 %v4040_v23  ;;  %2334 = vmatprep.subr.bf16.mxu1 %v4041_v24  ;;  %v4091_v63 = vld [vmem:[%s5684_s1 + $0x4e4] ss:$8 sps:$4 sm:$0xff]   ;;  %v4094_v1 = vld [vmem:[%s5684_s1 + $0x4e0] ss:$8 sps:$4 sm:$0xff]   ;;  %v4110_v21 = vld [vmem:[%s5684_s1 + $0x510] ss:$8 sps:$4 sm:$0xff]  }
  0x19   :  { %2786 = vmatprep.subr.bf16.mxu0 %v4043_v25  ;;  %v4103_v6 = vld [vmem:[%s5684_s1 + $0x104] ss:$8 sps:$4 sm:$0xff]   ;;  %v4101_v8 = vld [vmem:[%s5684_s1 + $0x100] ss:$8 sps:$4 sm:$0xff]   ;;  %v4133_v48 = vld [vmem:[%s5684_s1 + $0x154] ss:$8 sps:$4 sm:$0xff]  }
  0x1a   :  { %v4106_v7 = vld [vmem:[%s5684_s1 + $0x504] ss:$8 sps:$4 sm:$0xff]   ;;  %v4104_v9 = vld [vmem:[%s5684_s1 + $0x500] ss:$8 sps:$4 sm:$0xff]   ;;  %v4136_v49 = vld [vmem:[%s5684_s1 + $0x554] ss:$8 sps:$4 sm:$0xff]  }
  0x1b   :  { %2335 = vmatpush1.bf16.msra.mxu1 %v4045_v26  ;;  %v34_v10 = vld [vmem:[%s5683_s0 + $0x80] sm:$0xff]  ;;  %v4134_v53 = vld [vmem:[%s5684_s1 + $0x550] ss:$8 sps:$4 sm:$0xff]  }
  0x1c   :  { %2787 = vmatpush1.bf16.msra.mxu0 %v4046_v27  ;;  %2336 = vmatprep.subr.bf16.mxu1 %v4047_v28  ;;  %v42_v13 = vld [vmem:[%s5683_s0 + $0xc0] sm:$0xff] }
  0x1d   :  { %2788 = vmatprep.subr.bf16.mxu0 %v4049_v29  ;;  %v38_v14 = vld [vmem:[%s5683_s0 + $0xa0] sm:$0xff]  ;;  %v3411_v18 = vcombine.high %v34_v10, %v42_v13  ;;  %v3410_v28 = vcombine.low %v34_v10, %v42_v13 }
  0x1e   :  { %v46_v15 = vld [vmem:[%s5683_s0 + $0xe0] sm:$0xff] }
  0x1f   :  { %2337 = vmatpush1.bf16.msra.mxu1 %v4051_v30  ;;  %v3419_v19 = vcombine.high %v38_v14, %v46_v15  ;;  %v4115_v22 = vld [vmem:[%s5684_s1 + $0x124] ss:$8 sps:$4 sm:$0xff]   ;;  %v4113_v24 = vld [vmem:[%s5684_s1 + $0x120] ss:$8 sps:$4 sm:$0xff]   ;;  %v3418_v29 = vcombine.low %v38_v14, %v46_v15 }
  0x20   :  { %2789 = vmatpush1.bf16.msra.mxu0 %v4052_v31  ;;  %2338 = vmatprep.subr.bf16.mxu1 %v4053_v32  ;;  %v4118_v23 = vld [vmem:[%s5684_s1 + $0x524] ss:$8 sps:$4 sm:$0xff]   ;;  %v4116_v25 = vld [vmem:[%s5684_s1 + $0x520] ss:$8 sps:$4 sm:$0xff]   ;;  %v4121_v32 = vld [vmem:[%s5684_s1 + $0x134] ss:$8 sps:$4 sm:$0xff]  }
  0x21   :  { %2790 = vmatprep.subr.bf16.mxu0 %v4055_v33  ;;  %v50_v26 = vld [vmem:[%s5683_s0 + $0x100] sm:$0xff]  ;;  %v4124_v33 = vld [vmem:[%s5684_s1 + $0x534] ss:$8 sps:$4 sm:$0xff]  }
  0x22   :  { %v58_v27 = vld [vmem:[%s5683_s0 + $0x140] sm:$0xff] }
  0x23   :  { %2339 = vmatpush1.bf16.msra.mxu1 %v4057_v34  ;;  %v54_v30 = vld [vmem:[%s5683_s0 + $0x120] sm:$0xff]  ;;  %v3427_v34 = vcombine.high %v50_v26, %v58_v27 }
  0x24   :  { %2791 = vmatpush1.bf16.msra.mxu0 %v4058_v35  ;;  %2340 = vmatprep.subr.bf16.mxu1 %v4059_v36  ;;  %v62_v31 = vld [vmem:[%s5683_s0 + $0x160] sm:$0xff]  ;;  %v4119_v36 = vld [vmem:[%s5684_s1 + $0x130] ss:$8 sps:$4 sm:$0xff]  }
  0x25   :  { %2792 = vmatprep.subr.bf16.mxu0 %v4061_v37  ;;  %v3435_v35 = vcombine.high %v54_v30, %v62_v31  ;;  %v4122_v37 = vld [vmem:[%s5684_s1 + $0x530] ss:$8 sps:$4 sm:$0xff]   ;;  %v4142_v55 = vld [vmem:[%s5684_s1 + $0x564] ss:$8 sps:$4 sm:$0xff]   ;;  %v4149_v14 = vld [vmem:[%s5684_s1 + $0x180] ss:$8 sps:$4 sm:$0xff]  }
  0x26   :  { %v110_v13 = vld [vmem:[%s5683_s0 + $0x2e0] sm:$0xff] }
  0x27   :  { %2341 = vmatpush1.bf16.msra.mxu1 %v4063_v38  ;;  %v4127_v38 = vld [vmem:[%s5684_s1 + $0x144] ss:$8 sps:$4 sm:$0xff]   ;;  %v4152_v15 = vld [vmem:[%s5684_s1 + $0x580] ss:$8 sps:$4 sm:$0xff]  }
  0x28   :  { %2793 = vmatpush1.bf16.msra.mxu0 %v4064_v39  ;;  %2342 = vmatprep.subr.bf16.mxu1 %v4065_v40  ;;  %v4130_v39 = vld [vmem:[%s5684_s1 + $0x544] ss:$8 sps:$4 sm:$0xff]   ;;  %v4125_v40 = vld [vmem:[%s5684_s1 + $0x140] ss:$8 sps:$4 sm:$0xff]  }
  0x29   :  { %2794 = vmatprep.subr.bf16.mxu0 %v4067_v41  ;;  %v4128_v41 = vld [vmem:[%s5684_s1 + $0x540] ss:$8 sps:$4 sm:$0xff]  }
  0x2b   :  { %2343 = vmatpush1.bf16.msra.mxu1 %v4069_v42  ;;  %v66_v42 = vld [vmem:[%s5683_s0 + $0x180] sm:$0xff] }
  0x2c   :  { %2795 = vmatpush1.bf16.msra.mxu0 %v4070_v43  ;;  %2344 = vmatprep.subr.bf16.mxu1 %v4071_v44  ;;  %v74_v43 = vld [vmem:[%s5683_s0 + $0x1c0] sm:$0xff]  ;;  %v3426_v44 = vcombine.low %v50_v26, %v58_v27 }
  0x2d   :  { %2796 = vmatprep.subr.bf16.mxu0 %v4073_v45  ;;  %v3434_v45 = vcombine.low %v54_v30, %v62_v31  ;;  %v3443_v50 = vcombine.high %v66_v42, %v74_v43  ;;  %v114_v26 = vld [vmem:[%s5683_s0 + $0x300] sm:$0xff] }
  0x2e   :  { %v118_v30 = vld [vmem:[%s5683_s0 + $0x320] sm:$0xff] }
  0x2f   :  { %2345 = vmatpush1.bf16.msra.mxu1 %v4075_v46  ;;  %v70_v46 = vld [vmem:[%s5683_s0 + $0x1a0] sm:$0xff] }
  0x30   :  { %2797 = vmatpush1.bf16.msra.mxu0 %v4076_v47  ;;  %2346 = vmatprep.subr.bf16.mxu1 %v4077_v52  ;;  %v78_v47 = vld [vmem:[%s5683_s0 + $0x1e0] sm:$0xff]  ;;  %v4131_v52 = vld [vmem:[%s5684_s1 + $0x150] ss:$8 sps:$4 sm:$0xff]  }
  0x31   :  { %2798 = vmatprep.subr.bf16.mxu0 %v4079_v54  ;;  %v3451_v51 = vcombine.high %v70_v46, %v78_v47  ;;  %v4139_v54 = vld [vmem:[%s5684_s1 + $0x164] ss:$8 sps:$4 sm:$0xff]  }
  0x32   :  { %v126_v31 = vld [vmem:[%s5683_s0 + $0x360] sm:$0xff] }
  0x33   :  { %2347 = vmatpush1.bf16.msra.mxu1 %v4081_v56  ;;  %v4137_v56 = vld [vmem:[%s5684_s1 + $0x160] ss:$8 sps:$4 sm:$0xff]  }
  0x34   :  { %2799 = vmatpush1.bf16.msra.mxu0 %v4082_v57  ;;  %2348 = vmatprep.subr.bf16.mxu1 %v4083_v58  ;;  %v82_v57 = vld [vmem:[%s5683_s0 + $0x200] sm:$0xff] }
  0x35   :  { %2800 = vmatprep.subr.bf16.mxu0 %v4085_v59  ;;  %v90_v58 = vld [vmem:[%s5683_s0 + $0x240] sm:$0xff]  ;;  %v3442_v59 = vcombine.low %v66_v42, %v74_v43 }
  0x36   :  { %v3458_v10 = vcombine.low %v82_v57, %v90_v58  ;;  %v130_v42 = vld [vmem:[%s5683_s0 + $0x380] sm:$0xff] }
  0x37   :  { %2349 = vmatpush1.bf16.msra.mxu1 %v4087_v60  ;;  %v3450_v60 = vcombine.low %v70_v46, %v78_v47  ;;  %v138_v43 = vld [vmem:[%s5683_s0 + $0x3c0] sm:$0xff] }
  0x38   :  { %2801 = vmatpush1.bf16.msra.mxu0 %v4088_v61  ;;  %2350 = vmatprep.subr.bf16.mxu1 %v4089_v62  ;;  %v86_v61 = vld [vmem:[%s5683_s0 + $0x220] sm:$0xff] }
  0x39   :  { %2802 = vmatprep.subr.bf16.mxu0 %v4091_v63  ;;  %v94_v62 = vld [vmem:[%s5683_s0 + $0x260] sm:$0xff] }
  0x3a   :  { %v4140_v63 = vld [vmem:[%s5684_s1 + $0x560] ss:$8 sps:$4 sm:$0xff]  }
  0x3b   :  { %2351 = vmatpush1.bf16.msra.mxu1 %v4093_v0  ;;  %v4145_v0 = vld [vmem:[%s5684_s1 + $0x174] ss:$8 sps:$4 sm:$0xff]   ;;  %v134_v46 = vld [vmem:[%s5683_s0 + $0x3a0] sm:$0xff] }
  0x3c   :  { %2803 = vmatpush1.bf16.msra.mxu0 %v4094_v1  ;;  %2352 = vmatprep.subr.bf16.mxu1 %v4095_v2  ;;  %v4148_v1 = vld [vmem:[%s5684_s1 + $0x574] ss:$8 sps:$4 sm:$0xff]   ;;  %v3459_v2 = vcombine.high %v82_v57, %v90_v58  ;;  %v142_v47 = vld [vmem:[%s5683_s0 + $0x3e0] sm:$0xff]  ;;  %v19_v58 = vld [vmem:[%s5683_s0 + $0x8] sm:$0xff] }
  0x3d   :  { %2804 = vmatprep.subr.bf16.mxu0 %v4097_v3  ;;  %v3467_v3 = vcombine.high %v86_v61, %v94_v62  ;;  %v4188_v57 = vld [vmem:[%s5684_s1 + $0x5e0] ss:$8 sps:$4 sm:$0xff]  }
  0x3f   :  { %2353 = vmatpush1.bf16.msra.mxu1 %v4099_v4  ;;  %v4143_v4 = vld [vmem:[%s5684_s1 + $0x170] ss:$8 sps:$4 sm:$0xff]  }
  0x40   :  { %2805 = vmatpush1.bf16.msra.mxu0 %v4100_v5  ;;  %2435 = vmatprep.subr.bf16.mxu1 %v4103_v6  ;;  %v4146_v5 = vld [vmem:[%s5684_s1 + $0x570] ss:$8 sps:$4 sm:$0xff]   ;;  %v4151_v6 = vld [vmem:[%s5684_s1 + $0x184] ss:$8 sps:$4 sm:$0xff]  }
  0x41   :  { %2887 = vmatprep.subr.bf16.mxu0 %v4106_v7  ;;  %v4154_v7 = vld [vmem:[%s5684_s1 + $0x584] ss:$8 sps:$4 sm:$0xff]  }
  0x42   :  { %2355 = vmatmul.mubr.bf16.vlgmr.msra.gmra.mrb[0].mxu1 %v3394_v11  ;;  %v3466_v11 = vcombine.low %v86_v61, %v94_v62  ;;  %v3514_v61 = vcombine.low %v134_v46, %v142_v47  ;;  %v23_v62 = vld [vmem:[%s5683_s0 + $0x28] sm:$0xff] }
  0x43   :  { %2807 = vmatmul.mubr.bf16.vlgmr.msra.gmra.mrb[0].mxu0 %v3402_v12  ;;  %2436 = vmatpush1.bf16.msra.mxu1 %v4101_v8  ;;  %v98_v8 = vld [vmem:[%s5683_s0 + $0x280] sm:$0xff] }
  0x44   :  { %2888 = vmatpush1.bf16.msra.mxu0 %v4104_v9  ;;  %2437 = vmatprep.subr.bf16.mxu1 %v4109_v16  ;;  %v106_v9 = vld [vmem:[%s5683_s0 + $0x2c0] sm:$0xff]  ;;  %v4157_v16 = vld [vmem:[%s5684_s1 + $0x194] ss:$8 sps:$4 sm:$0xff]  }
  0x45   :  { %2889 = vmatprep.subr.bf16.mxu0 %v4112_v17  ;;  %2364 = vmatprep.mubr.bf16.mxu1 %v3411_v18  ;;  %v102_v12 = vld [vmem:[%s5683_s0 + $0x2a0] sm:$0xff]  ;;  %v4160_v17 = vld [vmem:[%s5684_s1 + $0x594] ss:$8 sps:$4 sm:$0xff]   ;;  %v3475_v18 = vcombine.high %v98_v8, %v106_v9  ;;  %v3474_v27 = vcombine.low %v98_v8, %v106_v9  ;;  %v35_v9 = vld [vmem:[%s5683_s0 + $0x88] sm:$0xff] }
  0x46   :  { %2816 = vmatprep.mubr.bf16.mxu0 %v3419_v19  ;;  %v3483_v19 = vcombine.high %v102_v12, %v110_v13  ;;  %v4197_v8 = vld [vmem:[%s5684_s1 + $0x200] ss:$8 sps:$4 sm:$0xff]  }
  0x47   :  { %2438 = vmatpush1.bf16.msra.mxu1 %v4107_v20  ;;  %v4155_v20 = vld [vmem:[%s5684_s1 + $0x190] ss:$8 sps:$4 sm:$0xff]  }
  0x48   :  { %2890 = vmatpush1.bf16.msra.mxu0 %v4110_v21  ;;  %2439 = vmatprep.subr.bf16.mxu1 %v4115_v22  ;;  %v4158_v21 = vld [vmem:[%s5684_s1 + $0x590] ss:$8 sps:$4 sm:$0xff]   ;;  %v4163_v22 = vld [vmem:[%s5684_s1 + $0x1a4] ss:$8 sps:$4 sm:$0xff]  }
  0x49   :  { %2891 = vmatprep.subr.bf16.mxu0 %v4118_v23  ;;  %v4166_v23 = vld [vmem:[%s5684_s1 + $0x5a4] ss:$8 sps:$4 sm:$0xff]  }
  0x4a   :  { %2365 = vmatmul.mubr.bf16.gmra.mrb[4].mxu1 %v3410_v28  ;;  %v3482_v28 = vcombine.low %v102_v12, %v110_v13  ;;  %v39_v13 = vld [vmem:[%s5683_s0 + $0xa8] sm:$0xff] }
  0x4b   :  { %2817 = vmatmul.mubr.bf16.gmra.mrb[4].mxu0 %v3418_v29  ;;  %2440 = vmatpush1.bf16.msra.mxu1 %v4113_v24  ;;  %v4161_v24 = vld [vmem:[%s5684_s1 + $0x1a0] ss:$8 sps:$4 sm:$0xff]  }
  0x4c   :  { %2892 = vmatpush1.bf16.msra.mxu0 %v4116_v25  ;;  %2441 = vmatprep.subr.bf16.mxu1 %v4121_v32  ;;  %v4164_v25 = vld [vmem:[%s5684_s1 + $0x5a0] ss:$8 sps:$4 sm:$0xff]   ;;  %v4169_v32 = vld [vmem:[%s5684_s1 + $0x1b4] ss:$8 sps:$4 sm:$0xff]  }
  0x4d   :  { %2893 = vmatprep.subr.bf16.mxu0 %v4124_v33  ;;  %2374 = vmatprep.mubr.bf16.mxu1 %v3427_v34  ;;  %v122_v29 = vld [vmem:[%s5683_s0 + $0x340] sm:$0xff]  ;;  %v4172_v33 = vld [vmem:[%s5684_s1 + $0x5b4] ss:$8 sps:$4 sm:$0xff]  }
  0x4e   :  { %2826 = vmatprep.mubr.bf16.mxu0 %v3435_v35  ;;  %v3491_v34 = vcombine.high %v114_v26, %v122_v29  ;;  %v3499_v35 = vcombine.high %v118_v30, %v126_v31 }
  0x4f   :  { %2442 = vmatpush1.bf16.msra.mxu1 %v4119_v36  ;;  %v4167_v36 = vld [vmem:[%s5684_s1 + $0x1b0] ss:$8 sps:$4 sm:$0xff]  }
  0x50   :  { %2894 = vmatpush1.bf16.msra.mxu0 %v4122_v37  ;;  %2443 = vmatprep.subr.bf16.mxu1 %v4127_v38  ;;  %v4170_v37 = vld [vmem:[%s5684_s1 + $0x5b0] ss:$8 sps:$4 sm:$0xff]   ;;  %v4175_v38 = vld [vmem:[%s5684_s1 + $0x1c4] ss:$8 sps:$4 sm:$0xff]  }
  0x51   :  { %2895 = vmatprep.subr.bf16.mxu0 %v4130_v39  ;;  %v4178_v39 = vld [vmem:[%s5684_s1 + $0x5c4] ss:$8 sps:$4 sm:$0xff]  }
  0x52   :  { %2375 = vmatmul.mubr.bf16.gmra.mrb[8].mxu1 %v3426_v44  ;;  %v3490_v44 = vcombine.low %v114_v26, %v122_v29  ;;  %v63_v29 = vld [vmem:[%s5683_s0 + $0x168] sm:$0xff] }
  0x53   :  { %2827 = vmatmul.mubr.bf16.gmra.mrb[8].mxu0 %v3434_v45  ;;  %2444 = vmatpush1.bf16.msra.mxu1 %v4125_v40  ;;  %v4173_v40 = vld [vmem:[%s5684_s1 + $0x1c0] ss:$8 sps:$4 sm:$0xff]   ;;  %v3498_v45 = vcombine.low %v118_v30, %v126_v31 }
  0x54   :  { %2896 = vmatpush1.bf16.msra.mxu0 %v4128_v41  ;;  %2445 = vmatprep.subr.bf16.mxu1 %v4133_v48  ;;  %v4176_v41 = vld [vmem:[%s5684_s1 + $0x5c0] ss:$8 sps:$4 sm:$0xff]   ;;  %v4181_v48 = vld [vmem:[%s5684_s1 + $0x1d4] ss:$8 sps:$4 sm:$0xff]  }
  0x55   :  { %2897 = vmatprep.subr.bf16.mxu0 %v4136_v49  ;;  %2384 = vmatprep.mubr.bf16.mxu1 %v3443_v50  ;;  %v4184_v49 = vld [vmem:[%s5684_s1 + $0x5d4] ss:$8 sps:$4 sm:$0xff]   ;;  %v3507_v50 = vcombine.high %v130_v42, %v138_v43  ;;  %v4209_v30 = vld [vmem:[%s5684_s1 + $0x220] ss:$8 sps:$4 sm:$0xff]  }
  0x56   :  { %2836 = vmatprep.mubr.bf16.mxu0 %v3451_v51  ;;  %v3515_v51 = vcombine.high %v134_v46, %v142_v47  ;;  %v4212_v31 = vld [vmem:[%s5684_s1 + $0x620] ss:$8 sps:$4 sm:$0xff]  }
  0x57   :  { %2446 = vmatpush1.bf16.msra.mxu1 %v4131_v52  ;;  %v4179_v52 = vld [vmem:[%s5684_s1 + $0x1d0] ss:$8 sps:$4 sm:$0xff]   ;;  %v71_v46 = vld [vmem:[%s5683_s0 + $0x1a8] sm:$0xff] }
  0x58   :  { %2898 = vmatpush1.bf16.msra.mxu0 %v4134_v53  ;;  %2447 = vmatprep.subr.bf16.mxu1 %v4139_v54  ;;  %v4182_v53 = vld [vmem:[%s5684_s1 + $0x5d0] ss:$8 sps:$4 sm:$0xff]   ;;  %v4187_v54 = vld [vmem:[%s5684_s1 + $0x1e4] ss:$8 sps:$4 sm:$0xff]  }
  0x59   :  { %2899 = vmatprep.subr.bf16.mxu0 %v4142_v55  ;;  %v4190_v55 = vld [vmem:[%s5684_s1 + $0x5e4] ss:$8 sps:$4 sm:$0xff]  }
  0x5a   :  { %2385 = vmatmul.mubr.bf16.gmra.mrb[12].mxu1 %v3442_v59  ;;  %v27_v59 = vld [vmem:[%s5683_s0 + $0x48] sm:$0xff] }
  0x5b   :  { %2837 = vmatmul.mubr.bf16.gmra.mrb[12].mxu0 %v3450_v60  ;;  %2448 = vmatpush1.bf16.msra.mxu1 %v4137_v56  ;;  %v4185_v56 = vld [vmem:[%s5684_s1 + $0x1e0] ss:$8 sps:$4 sm:$0xff]   ;;  %v3506_v60 = vcombine.low %v130_v42, %v138_v43 }
  0x5c   :  { %2900 = vmatpush1.bf16.msra.mxu0 %v4140_v63  ;;  %2449 = vmatprep.subr.bf16.mxu1 %v4145_v0  ;;  %v31_v63 = vld [vmem:[%s5683_s0 + $0x68] sm:$0xff]  ;;  %v4193_v0 = vld [vmem:[%s5684_s1 + $0x1f4] ss:$8 sps:$4 sm:$0xff]  }
  0x5d   :  { %2901 = vmatprep.subr.bf16.mxu0 %v4148_v1  ;;  %2394 = vmatprep.mubr.bf16.mxu1 %v3459_v2  ;;  %v4196_v1 = vld [vmem:[%s5684_s1 + $0x5f4] ss:$8 sps:$4 sm:$0xff]   ;;  %v3397_v2 = vcombine.high %v19_v58, %v27_v59  ;;  %v3404_v12 = vcombine.low %v23_v62, %v31_v63  ;;  %v67_v42 = vld [vmem:[%s5683_s0 + $0x188] sm:$0xff] }
  0x5e   :  { %2846 = vmatprep.mubr.bf16.mxu0 %v3467_v3  ;;  %v3405_v3 = vcombine.high %v23_v62, %v31_v63  ;;  %v79_v47 = vld [vmem:[%s5683_s0 + $0x1e8] sm:$0xff] }
  0x5f   :  { %2450 = vmatpush1.bf16.msra.mxu1 %v4143_v4  ;;  %v4191_v4 = vld [vmem:[%s5684_s1 + $0x1f0] ss:$8 sps:$4 sm:$0xff]   ;;  %v87_v62 = vld [vmem:[%s5683_s0 + $0x228] sm:$0xff] }
  0x60   :  { %2902 = vmatpush1.bf16.msra.mxu0 %v4146_v5  ;;  %2451 = vmatprep.subr.bf16.mxu1 %v4151_v6  ;;  %v4194_v5 = vld [vmem:[%s5684_s1 + $0x5f0] ss:$8 sps:$4 sm:$0xff]   ;;  %v4199_v6 = vld [vmem:[%s5684_s1 + $0x204] ss:$8 sps:$4 sm:$0xff]  }
  0x61   :  { %2903 = vmatprep.subr.bf16.mxu0 %v4154_v7  ;;  %v4202_v7 = vld [vmem:[%s5684_s1 + $0x604] ss:$8 sps:$4 sm:$0xff]  }
  0x62   :  { %2395 = vmatmul.mubr.bf16.gmra.mrb[16].mxu1 %v3458_v10  ;;  %v43_v10 = vld [vmem:[%s5683_s0 + $0xc8] sm:$0xff] }
  0x63   :  { %2847 = vmatmul.mubr.bf16.gmra.mrb[16].mxu0 %v3466_v11  ;;  %2452 = vmatpush1.bf16.msra.mxu1 %v4149_v14  ;;  %v3396_v11 = vcombine.low %v19_v58, %v27_v59  ;;  %v47_v14 = vld [vmem:[%s5683_s0 + $0xe8] sm:$0xff]  ;;  %v3412_v26 = vcombine.low %v35_v9, %v43_v10 }
  0x64   :  { %2904 = vmatpush1.bf16.msra.mxu0 %v4152_v15  ;;  %2453 = vmatprep.subr.bf16.mxu1 %v4157_v16  ;;  %v4200_v15 = vld [vmem:[%s5684_s1 + $0x600] ss:$8 sps:$4 sm:$0xff]   ;;  %v4205_v16 = vld [vmem:[%s5684_s1 + $0x214] ss:$8 sps:$4 sm:$0xff]  }
  0x65   :  { %2905 = vmatprep.subr.bf16.mxu0 %v4160_v17  ;;  %2404 = vmatprep.mubr.bf16.mxu1 %v3475_v18  ;;  %v4208_v17 = vld [vmem:[%s5684_s1 + $0x614] ss:$8 sps:$4 sm:$0xff]   ;;  %v3413_v18 = vcombine.high %v35_v9, %v43_v10  ;;  %v83_v58 = vld [vmem:[%s5683_s0 + $0x208] sm:$0xff] }
  0x66   :  { %2856 = vmatprep.mubr.bf16.mxu0 %v3483_v19  ;;  %v3421_v19 = vcombine.high %v39_v13, %v47_v14  ;;  %v91_v59 = vld [vmem:[%s5683_s0 + $0x248] sm:$0xff] }
  0x67   :  { %2454 = vmatpush1.bf16.msra.mxu1 %v4155_v20  ;;  %v4203_v20 = vld [vmem:[%s5684_s1 + $0x210] ss:$8 sps:$4 sm:$0xff]   ;;  %v95_v63 = vld [vmem:[%s5683_s0 + $0x268] sm:$0xff] }
  0x68   :  { %2906 = vmatpush1.bf16.msra.mxu0 %v4158_v21  ;;  %2455 = vmatprep.subr.bf16.mxu1 %v4163_v22  ;;  %v4206_v21 = vld [vmem:[%s5684_s1 + $0x610] ss:$8 sps:$4 sm:$0xff]   ;;  %v4211_v22 = vld [vmem:[%s5684_s1 + $0x224] ss:$8 sps:$4 sm:$0xff]   ;;  %v4248_v9 = vld [vmem:[%s5684_s1 + $0x680] ss:$8 sps:$4 sm:$0xff]  }
  0x69   :  { %2907 = vmatprep.subr.bf16.mxu0 %v4166_v23  ;;  %v4214_v23 = vld [vmem:[%s5684_s1 + $0x624] ss:$8 sps:$4 sm:$0xff]  }
  0x6a   :  { %2405 = vmatmul.mubr.bf16.gmra.mrb[20].mxu1 %v3474_v27  ;;  %v3420_v27 = vcombine.low %v39_v13, %v47_v14  ;;  %v99_v10 = vld [vmem:[%s5683_s0 + $0x288] sm:$0xff]  ;;  %v3468_v13 = vcombine.low %v87_v62, %v95_v63 }
  0x6b   :  { %2857 = vmatmul.mubr.bf16.gmra.mrb[20].mxu0 %v3482_v28  ;;  %2456 = vmatpush1.bf16.msra.mxu1 %v4161_v24  ;;  %v51_v24 = vld [vmem:[%s5683_s0 + $0x108] sm:$0xff] }
  0x6c   :  { %2908 = vmatpush1.bf16.msra.mxu0 %v4164_v25  ;;  %2457 = vmatprep.subr.bf16.mxu1 %v4169_v32  ;;  %v59_v25 = vld [vmem:[%s5683_s0 + $0x148] sm:$0xff]  ;;  %v4217_v32 = vld [vmem:[%s5684_s1 + $0x234] ss:$8 sps:$4 sm:$0xff]  }
  0x6d   :  { %2909 = vmatprep.subr.bf16.mxu0 %v4172_v33  ;;  %2414 = vmatprep.mubr.bf16.mxu1 %v3491_v34  ;;  %v55_v28 = vld [vmem:[%s5683_s0 + $0x128] sm:$0xff]  ;;  %v4220_v33 = vld [vmem:[%s5684_s1 + $0x634] ss:$8 sps:$4 sm:$0xff]   ;;  %v3429_v34 = vcombine.high %v51_v24, %v59_v25  ;;  %v3428_v43 = vcombine.low %v51_v24, %v59_v25 }
  0x6e   :  { %2866 = vmatprep.mubr.bf16.mxu0 %v3499_v35  ;;  %v3437_v35 = vcombine.high %v55_v28, %v63_v29  ;;  %v103_v14 = vld [vmem:[%s5683_s0 + $0x2a8] sm:$0xff] }
  0x6f   :  { %2458 = vmatpush1.bf16.msra.mxu1 %v4167_v36  ;;  %v4215_v36 = vld [vmem:[%s5684_s1 + $0x230] ss:$8 sps:$4 sm:$0xff]   ;;  %v4257_v24 = vld [vmem:[%s5684_s1 + $0x2a0] ss:$8 sps:$4 sm:$0xff]  }
  0x70   :  { %2910 = vmatpush1.bf16.msra.mxu0 %v4170_v37  ;;  %2459 = vmatprep.subr.bf16.mxu1 %v4175_v38  ;;  %v4218_v37 = vld [vmem:[%s5684_s1 + $0x630] ss:$8 sps:$4 sm:$0xff]   ;;  %v4223_v38 = vld [vmem:[%s5684_s1 + $0x244] ss:$8 sps:$4 sm:$0xff]  }
  0x71   :  { %2911 = vmatprep.subr.bf16.mxu0 %v4178_v39  ;;  %v4226_v39 = vld [vmem:[%s5684_s1 + $0x644] ss:$8 sps:$4 sm:$0xff]  }
  0x72   :  { %2415 = vmatmul.mubr.bf16.gmra.mrb[24].mxu1 %v3490_v44  ;;  %v3436_v44 = vcombine.low %v55_v28, %v63_v29  ;;  %v115_v25 = vld [vmem:[%s5683_s0 + $0x308] sm:$0xff] }
  0x73   :  { %2867 = vmatmul.mubr.bf16.gmra.mrb[24].mxu0 %v3498_v45  ;;  %2460 = vmatpush1.bf16.msra.mxu1 %v4173_v40  ;;  %v4221_v40 = vld [vmem:[%s5684_s1 + $0x240] ss:$8 sps:$4 sm:$0xff]  }
  0x74   :  { %2912 = vmatpush1.bf16.msra.mxu0 %v4176_v41  ;;  %2461 = vmatprep.subr.bf16.mxu1 %v4181_v48  ;;  %v4224_v41 = vld [vmem:[%s5684_s1 + $0x640] ss:$8 sps:$4 sm:$0xff]   ;;  %v4229_v48 = vld [vmem:[%s5684_s1 + $0x254] ss:$8 sps:$4 sm:$0xff]  }
  0x75   :  { %2913 = vmatprep.subr.bf16.mxu0 %v4184_v49  ;;  %2424 = vmatprep.mubr.bf16.mxu1 %v3507_v50  ;;  %v75_v45 = vld [vmem:[%s5683_s0 + $0x1c8] sm:$0xff]  ;;  %v4232_v49 = vld [vmem:[%s5684_s1 + $0x654] ss:$8 sps:$4 sm:$0xff]  }
  0x76   :  { %2876 = vmatprep.mubr.bf16.mxu0 %v3515_v51  ;;  %v3445_v50 = vcombine.high %v67_v42, %v75_v45  ;;  %v3453_v51 = vcombine.high %v71_v46, %v79_v47  ;;  %v119_v29 = vld [vmem:[%s5683_s0 + $0x328] sm:$0xff] }
  0x77   :  { %2462 = vmatpush1.bf16.msra.mxu1 %v4179_v52  ;;  %v4227_v52 = vld [vmem:[%s5684_s1 + $0x250] ss:$8 sps:$4 sm:$0xff]  }
  0x78   :  { %2914 = vmatpush1.bf16.msra.mxu0 %v4182_v53  ;;  %2463 = vmatprep.subr.bf16.mxu1 %v4187_v54  ;;  %v4230_v53 = vld [vmem:[%s5684_s1 + $0x650] ss:$8 sps:$4 sm:$0xff]   ;;  %v4235_v54 = vld [vmem:[%s5684_s1 + $0x264] ss:$8 sps:$4 sm:$0xff]  }
  0x79   :  { %2915 = vmatprep.subr.bf16.mxu0 %v4190_v55  ;;  %v4238_v55 = vld [vmem:[%s5684_s1 + $0x664] ss:$8 sps:$4 sm:$0xff]  }
  0x7a   :  { %2425 = vmatmul.mubr.bf16.gmra.mrb[28].mxu1 %v3506_v60  ;;  %v3444_v60 = vcombine.low %v67_v42, %v75_v45  ;;  %v143_v45 = vld [vmem:[%s5683_s0 + $0x3e8] sm:$0xff] }
  0x7b   :  { %2877 = vmatmul.mubr.bf16.gmra.mrb[28].mxu0 %v3514_v61  ;;  %2464 = vmatpush1.bf16.msra.mxu1 %v4185_v56  ;;  %v4233_v56 = vld [vmem:[%s5684_s1 + $0x260] ss:$8 sps:$4 sm:$0xff]   ;;  %v3452_v61 = vcombine.low %v71_v46, %v79_v47 }
  0x7c   :  { %2916 = vmatpush1.bf16.msra.mxu0 %v4188_v57  ;;  %2465 = vmatprep.subr.bf16.mxu1 %v4193_v0  ;;  %v4236_v57 = vld [vmem:[%s5684_s1 + $0x660] ss:$8 sps:$4 sm:$0xff]   ;;  %v4241_v0 = vld [vmem:[%s5684_s1 + $0x274] ss:$8 sps:$4 sm:$0xff]  }
  0x7d   :  { %2917 = vmatprep.subr.bf16.mxu0 %v4196_v1  ;;  %2467 = vmatprep.mubr.bf16.mxu1 %v3397_v2  ;;  %v4244_v1 = vld [vmem:[%s5684_s1 + $0x674] ss:$8 sps:$4 sm:$0xff]   ;;  %v3461_v2 = vcombine.high %v83_v58, %v91_v59  ;;  %v4269_v46 = vld [vmem:[%s5684_s1 + $0x2c0] ss:$8 sps:$4 sm:$0xff]  }
  0x7e   :  { %2919 = vmatprep.mubr.bf16.mxu0 %v3405_v3  ;;  %v3469_v3 = vcombine.high %v87_v62, %v95_v63  ;;  %v4272_v47 = vld [vmem:[%s5684_s1 + $0x6c0] ss:$8 sps:$4 sm:$0xff]   ;;  %v24_v62 = vld [vmem:[%s5683_s0 + $0x30] sm:$0xff] }
  0x7f   :  { %2466 = vmatpush1.bf16.msra.mxu1 %v4191_v4  ;;  %v4239_v4 = vld [vmem:[%s5684_s1 + $0x270] ss:$8 sps:$4 sm:$0xff]  }
  0x80   :  { %2918 = vmatpush1.bf16.msra.mxu0 %v4194_v5  ;;  %2548 = vmatprep.subr.bf16.mxu1 %v4199_v6  ;;  %v4242_v5 = vld [vmem:[%s5684_s1 + $0x670] ss:$8 sps:$4 sm:$0xff]   ;;  %v4247_v6 = vld [vmem:[%s5684_s1 + $0x284] ss:$8 sps:$4 sm:$0xff]  }
  0x81   :  { %3000 = vmatprep.subr.bf16.mxu0 %v4202_v7  ;;  %v4250_v7 = vld [vmem:[%s5684_s1 + $0x684] ss:$8 sps:$4 sm:$0xff]   ;;  %v32_v63 = vld [vmem:[%s5683_s0 + $0x70] sm:$0xff] }
  0x82   :  { %2468 = vmatmul.mubr.bf16.vlgmr.msra.gmra.mrb[0].mxu1 %v3396_v11  ;;  %v107_v11 = vld [vmem:[%s5683_s0 + $0x2c8] sm:$0xff] }
  0x83   :  { %2920 = vmatmul.mubr.bf16.vlgmr.msra.gmra.mrb[0].mxu0 %v3404_v12  ;;  %2549 = vmatpush1.bf16.msra.mxu1 %v4197_v8  ;;  %v4245_v8 = vld [vmem:[%s5684_s1 + $0x280] ss:$8 sps:$4 sm:$0xff]   ;;  %v3460_v12 = vcombine.low %v83_v58, %v91_v59  ;;  %v20_v58 = vld [vmem:[%s5683_s0 + $0x10] sm:$0xff] }
  0x84   :  { %3001 = vmatpush1.bf16.msra.mxu0 %v4200_v15  ;;  %2550 = vmatprep.subr.bf16.mxu1 %v4205_v16  ;;  %v111_v15 = vld [vmem:[%s5683_s0 + $0x2e8] sm:$0xff]  ;;  %v4253_v16 = vld [vmem:[%s5684_s1 + $0x294] ss:$8 sps:$4 sm:$0xff]  }
  0x85   :  { %3002 = vmatprep.subr.bf16.mxu0 %v4208_v17  ;;  %2477 = vmatprep.mubr.bf16.mxu1 %v3413_v18  ;;  %v4256_v17 = vld [vmem:[%s5684_s1 + $0x694] ss:$8 sps:$4 sm:$0xff]   ;;  %v3477_v18 = vcombine.high %v99_v10, %v107_v11  ;;  %v3484_v28 = vcombine.low %v103_v14, %v111_v15 }
  0x86   :  { %2929 = vmatprep.mubr.bf16.mxu0 %v3421_v19  ;;  %v3485_v19 = vcombine.high %v103_v14, %v111_v15  ;;  %v40_v14 = vld [vmem:[%s5683_s0 + $0xb0] sm:$0xff] }
  0x87   :  { %2551 = vmatpush1.bf16.msra.mxu1 %v4203_v20  ;;  %v4251_v20 = vld [vmem:[%s5684_s1 + $0x290] ss:$8 sps:$4 sm:$0xff]  }
  0x88   :  { %3003 = vmatpush1.bf16.msra.mxu0 %v4206_v21  ;;  %2552 = vmatprep.subr.bf16.mxu1 %v4211_v22  ;;  %v4254_v21 = vld [vmem:[%s5684_s1 + $0x690] ss:$8 sps:$4 sm:$0xff]   ;;  %v4259_v22 = vld [vmem:[%s5684_s1 + $0x2a4] ss:$8 sps:$4 sm:$0xff]  }
  0x89   :  { %3004 = vmatprep.subr.bf16.mxu0 %v4214_v23  ;;  %v4262_v23 = vld [vmem:[%s5684_s1 + $0x6a4] ss:$8 sps:$4 sm:$0xff]   ;;  %v48_v15 = vld [vmem:[%s5683_s0 + $0xf0] sm:$0xff] }
  0x8a   :  { %2478 = vmatmul.mubr.bf16.gmra.mrb[4].mxu1 %v3412_v26  ;;  %v123_v26 = vld [vmem:[%s5683_s0 + $0x348] sm:$0xff] }
  0x8b   :  { %2930 = vmatmul.mubr.bf16.gmra.mrb[4].mxu0 %v3420_v27  ;;  %2553 = vmatpush1.bf16.msra.mxu1 %v4209_v30  ;;  %v3476_v27 = vcombine.low %v99_v10, %v107_v11  ;;  %v127_v30 = vld [vmem:[%s5683_s0 + $0x368] sm:$0xff]  ;;  %v3492_v42 = vcombine.low %v115_v25, %v123_v26  ;;  %v36_v10 = vld [vmem:[%s5683_s0 + $0x90] sm:$0xff] }
  0x8c   :  { %3005 = vmatpush1.bf16.msra.mxu0 %v4212_v31  ;;  %2554 = vmatprep.subr.bf16.mxu1 %v4217_v32  ;;  %v4260_v31 = vld [vmem:[%s5684_s1 + $0x6a0] ss:$8 sps:$4 sm:$0xff]   ;;  %v4265_v32 = vld [vmem:[%s5684_s1 + $0x2b4] ss:$8 sps:$4 sm:$0xff]  }
  0x8d   :  { %3006 = vmatprep.subr.bf16.mxu0 %v4220_v33  ;;  %2487 = vmatprep.mubr.bf16.mxu1 %v3429_v34  ;;  %v4268_v33 = vld [vmem:[%s5684_s1 + $0x6b4] ss:$8 sps:$4 sm:$0xff]   ;;  %v3493_v34 = vcombine.high %v115_v25, %v123_v26  ;;  %v4308_v25 = vld [vmem:[%s5684_s1 + $0x720] ss:$8 sps:$4 sm:$0xff]  }
  0x8e   :  { %2939 = vmatprep.mubr.bf16.mxu0 %v3437_v35  ;;  %v3501_v35 = vcombine.high %v119_v29, %v127_v30  ;;  %v44_v11 = vld [vmem:[%s5683_s0 + $0xd0] sm:$0xff] }
  0x8f   :  { %2555 = vmatpush1.bf16.msra.mxu1 %v4215_v36  ;;  %v4263_v36 = vld [vmem:[%s5684_s1 + $0x2b0] ss:$8 sps:$4 sm:$0xff]  }
  0x90   :  { %3007 = vmatpush1.bf16.msra.mxu0 %v4218_v37  ;;  %2556 = vmatprep.subr.bf16.mxu1 %v4223_v38  ;;  %v4266_v37 = vld [vmem:[%s5684_s1 + $0x6b0] ss:$8 sps:$4 sm:$0xff]   ;;  %v4271_v38 = vld [vmem:[%s5684_s1 + $0x2c4] ss:$8 sps:$4 sm:$0xff]  }
  0x91   :  { %3008 = vmatprep.subr.bf16.mxu0 %v4226_v39  ;;  %v4274_v39 = vld [vmem:[%s5684_s1 + $0x6c4] ss:$8 sps:$4 sm:$0xff]   ;;  %v52_v26 = vld [vmem:[%s5683_s0 + $0x110] sm:$0xff] }
  0x92   :  { %2488 = vmatmul.mubr.bf16.gmra.mrb[8].mxu1 %v3428_v43  ;;  %v3500_v43 = vcombine.low %v119_v29, %v127_v30  ;;  %v3422_v29 = vcombine.low %v40_v14, %v48_v15  ;;  %v56_v30 = vld [vmem:[%s5683_s0 + $0x130] sm:$0xff] }
  0x93   :  { %2940 = vmatmul.mubr.bf16.gmra.mrb[8].mxu0 %v3436_v44  ;;  %2557 = vmatpush1.bf16.msra.mxu1 %v4221_v40  ;;  %v131_v40 = vld [vmem:[%s5683_s0 + $0x388] sm:$0xff] }
  0x94   :  { %3009 = vmatpush1.bf16.msra.mxu0 %v4224_v41  ;;  %2558 = vmatprep.subr.bf16.mxu1 %v4229_v48  ;;  %v139_v41 = vld [vmem:[%s5683_s0 + $0x3c8] sm:$0xff]  ;;  %v4277_v48 = vld [vmem:[%s5684_s1 + $0x2d4] ss:$8 sps:$4 sm:$0xff]  }
  0x95   :  { %3010 = vmatprep.subr.bf16.mxu0 %v4232_v49  ;;  %2497 = vmatprep.mubr.bf16.mxu1 %v3445_v50  ;;  %v135_v44 = vld [vmem:[%s5683_s0 + $0x3a8] sm:$0xff]  ;;  %v4280_v49 = vld [vmem:[%s5684_s1 + $0x6d4] ss:$8 sps:$4 sm:$0xff]   ;;  %v3509_v50 = vcombine.high %v131_v40, %v139_v41  ;;  %v3508_v59 = vcombine.low %v131_v40, %v139_v41 }
  0x96   :  { %2949 = vmatprep.mubr.bf16.mxu0 %v3453_v51  ;;  %v3517_v51 = vcombine.high %v135_v44, %v143_v45  ;;  %v68_v40 = vld [vmem:[%s5683_s0 + $0x190] sm:$0xff] }
  0x97   :  { %2559 = vmatpush1.bf16.msra.mxu1 %v4227_v52  ;;  %v4275_v52 = vld [vmem:[%s5684_s1 + $0x2d0] ss:$8 sps:$4 sm:$0xff]  }
  0x98   :  { %3011 = vmatpush1.bf16.msra.mxu0 %v4230_v53  ;;  %2560 = vmatprep.subr.bf16.mxu1 %v4235_v54  ;;  %v4278_v53 = vld [vmem:[%s5684_s1 + $0x6d0] ss:$8 sps:$4 sm:$0xff]   ;;  %v4283_v54 = vld [vmem:[%s5684_s1 + $0x2e4] ss:$8 sps:$4 sm:$0xff]  }
  0x99   :  { %3012 = vmatprep.subr.bf16.mxu0 %v4238_v55  ;;  %v4286_v55 = vld [vmem:[%s5684_s1 + $0x6e4] ss:$8 sps:$4 sm:$0xff]  }
  0x9a   :  { %2498 = vmatmul.mubr.bf16.gmra.mrb[12].mxu1 %v3444_v60  ;;  %v3516_v60 = vcombine.low %v135_v44, %v143_v45  ;;  %v72_v44 = vld [vmem:[%s5683_s0 + $0x1b0] sm:$0xff] }
  0x9b   :  { %2950 = vmatmul.mubr.bf16.gmra.mrb[12].mxu0 %v3452_v61  ;;  %2561 = vmatpush1.bf16.msra.mxu1 %v4233_v56  ;;  %v4281_v56 = vld [vmem:[%s5684_s1 + $0x2e0] ss:$8 sps:$4 sm:$0xff]   ;;  %v28_v61 = vld [vmem:[%s5683_s0 + $0x50] sm:$0xff] }
  0x9c   :  { %3013 = vmatpush1.bf16.msra.mxu0 %v4236_v57  ;;  %2562 = vmatprep.subr.bf16.mxu1 %v4241_v0  ;;  %v4284_v57 = vld [vmem:[%s5684_s1 + $0x6e0] ss:$8 sps:$4 sm:$0xff]   ;;  %v4289_v0 = vld [vmem:[%s5684_s1 + $0x2f4] ss:$8 sps:$4 sm:$0xff]  }
  0x9d   :  { %3014 = vmatprep.subr.bf16.mxu0 %v4244_v1  ;;  %2507 = vmatprep.mubr.bf16.mxu1 %v3461_v2  ;;  %v4292_v1 = vld [vmem:[%s5684_s1 + $0x6f4] ss:$8 sps:$4 sm:$0xff]   ;;  %v3399_v2 = vcombine.high %v20_v58, %v28_v61 }
  0x9e   :  { %2959 = vmatprep.mubr.bf16.mxu0 %v3469_v3  ;;  %v3407_v3 = vcombine.high %v24_v62, %v32_v63  ;;  %v80_v45 = vld [vmem:[%s5683_s0 + $0x1f0] sm:$0xff] }
  0x9f   :  { %2563 = vmatpush1.bf16.msra.mxu1 %v4239_v4  ;;  %v4287_v4 = vld [vmem:[%s5684_s1 + $0x2f0] ss:$8 sps:$4 sm:$0xff]  }
  0xa0   :  { %3015 = vmatpush1.bf16.msra.mxu0 %v4242_v5  ;;  %2564 = vmatprep.subr.bf16.mxu1 %v4247_v6  ;;  %v4290_v5 = vld [vmem:[%s5684_s1 + $0x6f0] ss:$8 sps:$4 sm:$0xff]   ;;  %v4295_v6 = vld [vmem:[%s5684_s1 + $0x304] ss:$8 sps:$4 sm:$0xff]  }
  0xa1   :  { %3016 = vmatprep.subr.bf16.mxu0 %v4250_v7  ;;  %v4298_v7 = vld [vmem:[%s5684_s1 + $0x704] ss:$8 sps:$4 sm:$0xff]  }
  0xa2   :  { %2508 = vmatmul.mubr.bf16.gmra.mrb[16].mxu1 %v3460_v12  ;;  %v3398_v12 = vcombine.low %v20_v58, %v28_v61 }
  0xa3   :  { %2960 = vmatmul.mubr.bf16.gmra.mrb[16].mxu0 %v3468_v13  ;;  %2565 = vmatpush1.bf16.msra.mxu1 %v4245_v8  ;;  %v4293_v8 = vld [vmem:[%s5684_s1 + $0x300] ss:$8 sps:$4 sm:$0xff]   ;;  %v3406_v13 = vcombine.low %v24_v62, %v32_v63 }
  0xa4   :  { %3017 = vmatpush1.bf16.msra.mxu0 %v4248_v9  ;;  %2566 = vmatprep.subr.bf16.mxu1 %v4253_v16  ;;  %v4296_v9 = vld [vmem:[%s5684_s1 + $0x700] ss:$8 sps:$4 sm:$0xff]   ;;  %v4301_v16 = vld [vmem:[%s5684_s1 + $0x314] ss:$8 sps:$4 sm:$0xff]  }
  0xa5   :  { %3018 = vmatprep.subr.bf16.mxu0 %v4256_v17  ;;  %2517 = vmatprep.mubr.bf16.mxu1 %v3477_v18  ;;  %v4304_v17 = vld [vmem:[%s5684_s1 + $0x714] ss:$8 sps:$4 sm:$0xff]   ;;  %v3415_v18 = vcombine.high %v36_v10, %v44_v11 }
  0xa6   :  { %2969 = vmatprep.mubr.bf16.mxu0 %v3485_v19  ;;  %v3423_v19 = vcombine.high %v40_v14, %v48_v15 }
  0xa7   :  { %2567 = vmatpush1.bf16.msra.mxu1 %v4251_v20  ;;  %v4299_v20 = vld [vmem:[%s5684_s1 + $0x310] ss:$8 sps:$4 sm:$0xff]  }
  0xa8   :  { %3019 = vmatpush1.bf16.msra.mxu0 %v4254_v21  ;;  %2568 = vmatprep.subr.bf16.mxu1 %v4259_v22  ;;  %v4302_v21 = vld [vmem:[%s5684_s1 + $0x710] ss:$8 sps:$4 sm:$0xff]   ;;  %v4307_v22 = vld [vmem:[%s5684_s1 + $0x324] ss:$8 sps:$4 sm:$0xff]  }
  0xa9   :  { %3020 = vmatprep.subr.bf16.mxu0 %v4262_v23  ;;  %v4310_v23 = vld [vmem:[%s5684_s1 + $0x724] ss:$8 sps:$4 sm:$0xff]  }
  0xaa   :  { %2518 = vmatmul.mubr.bf16.gmra.mrb[20].mxu1 %v3476_v27  ;;  %v60_v27 = vld [vmem:[%s5683_s0 + $0x150] sm:$0xff] }
  0xab   :  { %2970 = vmatmul.mubr.bf16.gmra.mrb[20].mxu0 %v3484_v28  ;;  %2569 = vmatpush1.bf16.msra.mxu1 %v4257_v24  ;;  %v4305_v24 = vld [vmem:[%s5684_s1 + $0x320] ss:$8 sps:$4 sm:$0xff]   ;;  %v3414_v28 = vcombine.low %v36_v10, %v44_v11  ;;  %v3430_v41 = vcombine.low %v52_v26, %v60_v27 }
  0xac   :  { %3021 = vmatpush1.bf16.msra.mxu0 %v4260_v31  ;;  %2570 = vmatprep.subr.bf16.mxu1 %v4265_v32  ;;  %v64_v31 = vld [vmem:[%s5683_s0 + $0x170] sm:$0xff] }
  0xad   :  { %3022 = vmatprep.subr.bf16.mxu0 %v4268_v33  ;;  %2527 = vmatprep.mubr.bf16.mxu1 %v3493_v34  ;;  %v4313_v32 = vld [vmem:[%s5684_s1 + $0x334] ss:$8 sps:$4 sm:$0xff]   ;;  %v3431_v34 = vcombine.high %v52_v26, %v60_v27 }
  0xae   :  { %2979 = vmatprep.mubr.bf16.mxu0 %v3501_v35  ;;  %v4316_v33 = vld [vmem:[%s5684_s1 + $0x734] ss:$8 sps:$4 sm:$0xff]   ;;  %v3439_v35 = vcombine.high %v56_v30, %v64_v31 }
  0xaf   :  { %2571 = vmatpush1.bf16.msra.mxu1 %v4263_v36  ;;  %v4311_v36 = vld [vmem:[%s5684_s1 + $0x330] ss:$8 sps:$4 sm:$0xff]  }
  0xb0   :  { %3023 = vmatpush1.bf16.msra.mxu0 %v4266_v37  ;;  %2572 = vmatprep.subr.bf16.mxu1 %v4271_v38  ;;  %v4314_v37 = vld [vmem:[%s5684_s1 + $0x730] ss:$8 sps:$4 sm:$0xff]   ;;  %v4319_v38 = vld [vmem:[%s5684_s1 + $0x344] ss:$8 sps:$4 sm:$0xff]  }
  0xb1   :  { %3024 = vmatprep.subr.bf16.mxu0 %v4274_v39  ;;  %v4322_v39 = vld [vmem:[%s5684_s1 + $0x744] ss:$8 sps:$4 sm:$0xff]  }
  0xb2   :  { %2528 = vmatmul.mubr.bf16.gmra.mrb[24].mxu1 %v3492_v42  ;;  %v3438_v42 = vcombine.low %v56_v30, %v64_v31 }
  0xb3   :  { %2980 = vmatmul.mubr.bf16.gmra.mrb[24].mxu0 %v3500_v43  ;;  %2573 = vmatpush1.bf16.msra.mxu1 %v4269_v46  ;;  %v76_v43 = vld [vmem:[%s5683_s0 + $0x1d0] sm:$0xff]  ;;  %v4317_v46 = vld [vmem:[%s5684_s1 + $0x340] ss:$8 sps:$4 sm:$0xff]  }
  0xb4   :  { %3025 = vmatpush1.bf16.msra.mxu0 %v4272_v47  ;;  %2574 = vmatprep.subr.bf16.mxu1 %v4277_v48  ;;  %v4320_v47 = vld [vmem:[%s5684_s1 + $0x740] ss:$8 sps:$4 sm:$0xff]   ;;  %v4325_v48 = vld [vmem:[%s5684_s1 + $0x354] ss:$8 sps:$4 sm:$0xff]  }
  0xb5   :  { %3026 = vmatprep.subr.bf16.mxu0 %v4280_v49  ;;  %2537 = vmatprep.mubr.bf16.mxu1 %v3509_v50  ;;  %v4328_v49 = vld [vmem:[%s5684_s1 + $0x754] ss:$8 sps:$4 sm:$0xff]   ;;  %v3447_v50 = vcombine.high %v68_v40, %v76_v43 }
  0xb6   :  { %2989 = vmatprep.mubr.bf16.mxu0 %v3517_v51  ;;  %v3455_v51 = vcombine.high %v72_v44, %v80_v45 }
  0xb7   :  { %2575 = vmatpush1.bf16.msra.mxu1 %v4275_v52  ;;  %v4323_v52 = vld [vmem:[%s5684_s1 + $0x350] ss:$8 sps:$4 sm:$0xff]  }
  0xb8   :  { %3027 = vmatpush1.bf16.msra.mxu0 %v4278_v53  ;;  %2576 = vmatprep.subr.bf16.mxu1 %v4283_v54  ;;  %v4326_v53 = vld [vmem:[%s5684_s1 + $0x750] ss:$8 sps:$4 sm:$0xff]   ;;  %v4331_v54 = vld [vmem:[%s5684_s1 + $0x364] ss:$8 sps:$4 sm:$0xff]  }
  0xb9   :  { %3028 = vmatprep.subr.bf16.mxu0 %v4286_v55  ;;  %v4334_v55 = vld [vmem:[%s5684_s1 + $0x764] ss:$8 sps:$4 sm:$0xff]  }
  0xba   :  { %2538 = vmatmul.mubr.bf16.gmra.mrb[28].mxu1 %v3508_v59 }
  0xbb   :  { %2990 = vmatmul.mubr.bf16.gmra.mrb[28].mxu0 %v3516_v60  ;;  %2577 = vmatpush1.bf16.msra.mxu1 %v4281_v56 }
  0xbc   :  { %3029 = vmatpush1.bf16.msra.mxu0 %v4284_v57  ;;  %2578 = vmatprep.subr.bf16.mxu1 %v4289_v0 }
  0xbd   :  { %3030 = vmatprep.subr.bf16.mxu0 %v4292_v1  ;;  %2580 = vmatprep.mubr.bf16.mxu1 %v3399_v2 }
  0xbe   :  { %3032 = vmatprep.mubr.bf16.mxu0 %v3407_v3 }
  0xbf   :  { %2579 = vmatpush1.bf16.msra.mxu1 %v4287_v4 }
  0xc0   :  { %3031 = vmatpush1.bf16.msra.mxu0 %v4290_v5  ;;  %2661 = vmatprep.subr.bf16.mxu1 %v4295_v6 }
  0xc1   :  { %3113 = vmatprep.subr.bf16.mxu0 %v4298_v7 }
  0xc2   :  { %2581 = vmatmul.mubr.bf16.vlgmr.msra.gmra.mrb[0].mxu1 %v3398_v12 }
  0xc3   :  { %3033 = vmatmul.mubr.bf16.vlgmr.msra.gmra.mrb[0].mxu0 %v3406_v13  ;;  %2662 = vmatpush1.bf16.msra.mxu1 %v4293_v8 }
  0xc4   :  { %3114 = vmatpush1.bf16.msra.mxu0 %v4296_v9  ;;  %2663 = vmatprep.subr.bf16.mxu1 %v4301_v16 }
  0xc5   :  { %3115 = vmatprep.subr.bf16.mxu0 %v4304_v17  ;;  %2590 = vmatprep.mubr.bf16.mxu1 %v3415_v18 }
  0xc6   :  { %3042 = vmatprep.mubr.bf16.mxu0 %v3423_v19 }
  0xc7   :  { %2664 = vmatpush1.bf16.msra.mxu1 %v4299_v20 }
  0xc8   :  { %3116 = vmatpush1.bf16.msra.mxu0 %v4302_v21  ;;  %2665 = vmatprep.subr.bf16.mxu1 %v4307_v22 }
  0xc9   :  { %3117 = vmatprep.subr.bf16.mxu0 %v4310_v23 }
  0xca   :  { %2591 = vmatmul.mubr.bf16.gmra.mrb[4].mxu1 %v3414_v28 }
  0xcb   :  { %3043 = vmatmul.mubr.bf16.gmra.mrb[4].mxu0 %v3422_v29  ;;  %2666 = vmatpush1.bf16.msra.mxu1 %v4305_v24 }
  0xcc   :  { %3118 = vmatpush1.bf16.msra.mxu0 %v4308_v25  ;;  %2667 = vmatprep.subr.bf16.mxu1 %v4313_v32 }
  0xcd   :  { %3119 = vmatprep.subr.bf16.mxu0 %v4316_v33  ;;  %2600 = vmatprep.mubr.bf16.mxu1 %v3431_v34 }
  0xce   :  { %3052 = vmatprep.mubr.bf16.mxu0 %v3439_v35 }
  0xcf   :  { %2668 = vmatpush1.bf16.msra.mxu1 %v4311_v36 }
  0xd0   :  { %3120 = vmatpush1.bf16.msra.mxu0 %v4314_v37  ;;  %2669 = vmatprep.subr.bf16.mxu1 %v4319_v38 }
  0xd1   :  { %3121 = vmatprep.subr.bf16.mxu0 %v4322_v39 }
  0xd2   :  { %2601 = vmatmul.mubr.bf16.gmra.mrb[8].mxu1 %v3430_v41 }
  0xd3   :  { %3053 = vmatmul.mubr.bf16.gmra.mrb[8].mxu0 %v3438_v42  ;;  %2670 = vmatpush1.bf16.msra.mxu1 %v4317_v46 }
  0xd4   :  { %3122 = vmatpush1.bf16.msra.mxu0 %v4320_v47  ;;  %2671 = vmatprep.subr.bf16.mxu1 %v4325_v48 }
  0xd5   :  { %3123 = vmatprep.subr.bf16.mxu0 %v4328_v49 }
  0xd6   :  { %9 = vsyncpa [#allocation3], 0  ;;  %2610 = vmatprep.mubr.bf16.mxu1 %v3447_v50  ;;  %3062 = vmatprep.mubr.bf16.mxu0 %v3455_v51  ;;  %v84_v56 = vld [vmem:[%s5683_s0 + $0x210] sm:$0xff]  ;;  %v3446_v57 = vcombine.low %v68_v40, %v76_v43  ;;  %v3454_v58 = vcombine.low %v72_v44, %v80_v45  ;;  %v4329_v62 = vld [vmem:[%s5684_s1 + $0x360] ss:$8 sps:$4 sm:$0xff]  }
  0xd7   :  { %v92_v59 = vld [vmem:[%s5683_s0 + $0x250] sm:$0xff]  ;;  %2672 = vmatpush1.bf16.msra.mxu1 %v4323_v52  ;;  %v4332_v63 = vld [vmem:[%s5684_s1 + $0x760] ss:$8 sps:$4 sm:$0xff]   ;;  %v4343_v6 = vld [vmem:[%s5684_s1 + $0x384] ss:$8 sps:$4 sm:$0xff]  }
  0xd8   :  { %v88_v60 = vld [vmem:[%s5683_s0 + $0x230] sm:$0xff]  ;;  %3124 = vmatpush1.bf16.msra.mxu0 %v4326_v53  ;;  %2673 = vmatprep.subr.bf16.mxu1 %v4331_v54  ;;  %v3463_v2 = vcombine.high %v84_v56, %v92_v59  ;;  %v4346_v7 = vld [vmem:[%s5684_s1 + $0x784] ss:$8 sps:$4 sm:$0xff]   ;;  %v3462_v9 = vcombine.low %v84_v56, %v92_v59  ;;  %v4341_v14 = vld [vmem:[%s5684_s1 + $0x380] ss:$8 sps:$4 sm:$0xff]  }
  0xd9   :  { %v96_v61 = vld [vmem:[%s5683_s0 + $0x270] sm:$0xff]  ;;  %3125 = vmatprep.subr.bf16.mxu0 %v4334_v55  ;;  %v4344_v15 = vld [vmem:[%s5684_s1 + $0x780] ss:$8 sps:$4 sm:$0xff]   ;;  %v4355_v22 = vld [vmem:[%s5684_s1 + $0x3a4] ss:$8 sps:$4 sm:$0xff]  }
  0xda   :  { %v4337_v0 = vld [vmem:[%s5684_s1 + $0x374] ss:$8 sps:$4 sm:$0xff]   ;;  %v3471_v3 = vcombine.high %v88_v60, %v96_v61  ;;  %2611 = vmatmul.mubr.bf16.gmra.mrb[12].mxu1 %v3446_v57  ;;  %v4335_v4 = vld [vmem:[%s5684_s1 + $0x370] ss:$8 sps:$4 sm:$0xff]   ;;  %v3470_v10 = vcombine.low %v88_v60, %v96_v61  ;;  %v4358_v23 = vld [vmem:[%s5684_s1 + $0x7a4] ss:$8 sps:$4 sm:$0xff]  }
  0xdb   :  { %v4340_v1 = vld [vmem:[%s5684_s1 + $0x774] ss:$8 sps:$4 sm:$0xff]   ;;  %3063 = vmatmul.mubr.bf16.gmra.mrb[12].mxu0 %v3454_v58  ;;  %2674 = vmatpush1.bf16.msra.mxu1 %v4329_v62  ;;  %v4338_v5 = vld [vmem:[%s5684_s1 + $0x770] ss:$8 sps:$4 sm:$0xff]   ;;  %v4353_v30 = vld [vmem:[%s5684_s1 + $0x3a0] ss:$8 sps:$4 sm:$0xff]  }
  0xdc   :  { %3126 = vmatpush1.bf16.msra.mxu0 %v4332_v63  ;;  %2675 = vmatprep.subr.bf16.mxu1 %v4337_v0  ;;  %v100_v8 = vld [vmem:[%s5683_s0 + $0x290] sm:$0xff]  ;;  %v4356_v31 = vld [vmem:[%s5684_s1 + $0x7a0] ss:$8 sps:$4 sm:$0xff]   ;;  %v4367_v38 = vld [vmem:[%s5684_s1 + $0x3c4] ss:$8 sps:$4 sm:$0xff]  }
  0xdd   :  { %3127 = vmatprep.subr.bf16.mxu0 %v4340_v1  ;;  %2620 = vmatprep.mubr.bf16.mxu1 %v3463_v2  ;;  %v108_v11 = vld [vmem:[%s5683_s0 + $0x2d0] sm:$0xff]  ;;  %v4370_v39 = vld [vmem:[%s5684_s1 + $0x7c4] ss:$8 sps:$4 sm:$0xff]   ;;  %v4365_v46 = vld [vmem:[%s5684_s1 + $0x3c0] ss:$8 sps:$4 sm:$0xff]  }
  0xde   :  { %3072 = vmatprep.mubr.bf16.mxu0 %v3471_v3  ;;  %v104_v12 = vld [vmem:[%s5683_s0 + $0x2b0] sm:$0xff]  ;;  %v3479_v18 = vcombine.high %v100_v8, %v108_v11  ;;  %v3478_v25 = vcombine.low %v100_v8, %v108_v11  ;;  %v4368_v47 = vld [vmem:[%s5684_s1 + $0x7c0] ss:$8 sps:$4 sm:$0xff]   ;;  %v4379_v54 = vld [vmem:[%s5684_s1 + $0x3e4] ss:$8 sps:$4 sm:$0xff]  }
  0xdf   :  { %v112_v13 = vld [vmem:[%s5683_s0 + $0x2f0] sm:$0xff]  ;;  %2676 = vmatpush1.bf16.msra.mxu1 %v4335_v4  ;;  %v4382_v55 = vld [vmem:[%s5684_s1 + $0x7e4] ss:$8 sps:$4 sm:$0xff]   ;;  %v21_v56 = vld [vmem:[%s5683_s0 + $0x18] sm:$0xff] }
  0xe0   :  { %3128 = vmatpush1.bf16.msra.mxu0 %v4338_v5  ;;  %2677 = vmatprep.subr.bf16.mxu1 %v4343_v6  ;;  %v4349_v16 = vld [vmem:[%s5684_s1 + $0x394] ss:$8 sps:$4 sm:$0xff]   ;;  %v3487_v19 = vcombine.high %v104_v12, %v112_v13  ;;  %v4347_v20 = vld [vmem:[%s5684_s1 + $0x390] ss:$8 sps:$4 sm:$0xff]   ;;  %v3486_v26 = vcombine.low %v104_v12, %v112_v13  ;;  %v4377_v62 = vld [vmem:[%s5684_s1 + $0x3e0] ss:$8 sps:$4 sm:$0xff]  }
  0xe1   :  { %3129 = vmatprep.subr.bf16.mxu0 %v4346_v7  ;;  %v4352_v17 = vld [vmem:[%s5684_s1 + $0x794] ss:$8 sps:$4 sm:$0xff]   ;;  %v4350_v21 = vld [vmem:[%s5684_s1 + $0x790] ss:$8 sps:$4 sm:$0xff]   ;;  %v4380_v63 = vld [vmem:[%s5684_s1 + $0x7e0] ss:$8 sps:$4 sm:$0xff]  }
  0xe2   :  { %2621 = vmatmul.mubr.bf16.gmra.mrb[16].mxu1 %v3462_v9  ;;  %v116_v24 = vld [vmem:[%s5683_s0 + $0x310] sm:$0xff]  ;;  %v29_v59 = vld [vmem:[%s5683_s0 + $0x58] sm:$0xff] }
  0xe3   :  { %3073 = vmatmul.mubr.bf16.gmra.mrb[16].mxu0 %v3470_v10  ;;  %2678 = vmatpush1.bf16.msra.mxu1 %v4341_v14  ;;  %v124_v27 = vld [vmem:[%s5683_s0 + $0x350] sm:$0xff]  ;;  %v25_v60 = vld [vmem:[%s5683_s0 + $0x38] sm:$0xff]  ;;  %v3401_v2 = vcombine.high %v21_v56, %v29_v59  ;;  %v3400_v10 = vcombine.low %v21_v56, %v29_v59 }
  0xe4   :  { %3130 = vmatpush1.bf16.msra.mxu0 %v4344_v15  ;;  %2679 = vmatprep.subr.bf16.mxu1 %v4349_v16  ;;  %v120_v28 = vld [vmem:[%s5683_s0 + $0x330] sm:$0xff]  ;;  %v3495_v34 = vcombine.high %v116_v24, %v124_v27  ;;  %v3494_v41 = vcombine.low %v116_v24, %v124_v27  ;;  %v33_v61 = vld [vmem:[%s5683_s0 + $0x78] sm:$0xff] }
  0xe5   :  { %3131 = vmatprep.subr.bf16.mxu0 %v4352_v17  ;;  %2630 = vmatprep.mubr.bf16.mxu1 %v3479_v18  ;;  %v128_v29 = vld [vmem:[%s5683_s0 + $0x370] sm:$0xff]  ;;  %v3409_v3 = vcombine.high %v25_v60, %v33_v61  ;;  %v37_v6 = vld [vmem:[%s5683_s0 + $0x98] sm:$0xff]  ;;  %v3408_v11 = vcombine.low %v25_v60, %v33_v61 }
  0xe6   :  { %3082 = vmatprep.mubr.bf16.mxu0 %v3487_v19  ;;  %v4361_v32 = vld [vmem:[%s5684_s1 + $0x3b4] ss:$8 sps:$4 sm:$0xff]   ;;  %v3503_v35 = vcombine.high %v120_v28, %v128_v29  ;;  %v4359_v36 = vld [vmem:[%s5684_s1 + $0x3b0] ss:$8 sps:$4 sm:$0xff]   ;;  %v3502_v42 = vcombine.low %v120_v28, %v128_v29 }
  0xe7   :  { %2680 = vmatpush1.bf16.msra.mxu1 %v4347_v20  ;;  %v4364_v33 = vld [vmem:[%s5684_s1 + $0x7b4] ss:$8 sps:$4 sm:$0xff]   ;;  %v4362_v37 = vld [vmem:[%s5684_s1 + $0x7b0] ss:$8 sps:$4 sm:$0xff]  }
  0xe8   :  { %3132 = vmatpush1.bf16.msra.mxu0 %v4350_v21  ;;  %2681 = vmatprep.subr.bf16.mxu1 %v4355_v22  ;;  %v132_v40 = vld [vmem:[%s5683_s0 + $0x390] sm:$0xff]  ;;  %v45_v7 = vld [vmem:[%s5683_s0 + $0xd8] sm:$0xff] }
  0xe9   :  { %3133 = vmatprep.subr.bf16.mxu0 %v4358_v23  ;;  %v140_v43 = vld [vmem:[%s5683_s0 + $0x3d0] sm:$0xff]  ;;  %v41_v8 = vld [vmem:[%s5683_s0 + $0xb8] sm:$0xff]  ;;  %v3417_v12 = vcombine.high %v37_v6, %v45_v7  ;;  %v3416_v18 = vcombine.low %v37_v6, %v45_v7 }
  0xea   :  { %2631 = vmatmul.mubr.bf16.gmra.mrb[20].mxu1 %v3478_v25  ;;  %v136_v44 = vld [vmem:[%s5683_s0 + $0x3b0] sm:$0xff]  ;;  %v3511_v50 = vcombine.high %v132_v40, %v140_v43  ;;  %v3510_v57 = vcombine.low %v132_v40, %v140_v43  ;;  %v49_v9 = vld [vmem:[%s5683_s0 + $0xf8] sm:$0xff] }
  0xeb   :  { %3083 = vmatmul.mubr.bf16.gmra.mrb[20].mxu0 %v3486_v26  ;;  %2682 = vmatpush1.bf16.msra.mxu1 %v4353_v30  ;;  %v144_v45 = vld [vmem:[%s5683_s0 + $0x3f0] sm:$0xff]  ;;  %v3425_v13 = vcombine.high %v41_v8, %v49_v9  ;;  %v53_v14 = vld [vmem:[%s5683_s0 + $0x118] sm:$0xff]  ;;  %v3424_v19 = vcombine.low %v41_v8, %v49_v9 }
  0xec   :  { %3134 = vmatpush1.bf16.msra.mxu0 %v4356_v31  ;;  %2683 = vmatprep.subr.bf16.mxu1 %v4361_v32  ;;  %v4373_v48 = vld [vmem:[%s5684_s1 + $0x3d4] ss:$8 sps:$4 sm:$0xff]   ;;  %v3519_v51 = vcombine.high %v136_v44, %v144_v45  ;;  %v4371_v52 = vld [vmem:[%s5684_s1 + $0x3d0] ss:$8 sps:$4 sm:$0xff]   ;;  %v3518_v58 = vcombine.low %v136_v44, %v144_v45 }
  0xed   :  { %3135 = vmatprep.subr.bf16.mxu0 %v4364_v33  ;;  %2640 = vmatprep.mubr.bf16.mxu1 %v3495_v34  ;;  %v4376_v49 = vld [vmem:[%s5684_s1 + $0x7d4] ss:$8 sps:$4 sm:$0xff]   ;;  %v4374_v53 = vld [vmem:[%s5684_s1 + $0x7d0] ss:$8 sps:$4 sm:$0xff]  }
  0xee   :  { %3092 = vmatprep.mubr.bf16.mxu0 %v3503_v35  ;;  %v4385_v0 = vld [vmem:[%s5684_s1 + $0x3f4] ss:$8 sps:$4 sm:$0xff]   ;;  %v4383_v4 = vld [vmem:[%s5684_s1 + $0x3f0] ss:$8 sps:$4 sm:$0xff]  }
  0xef   :  { %2684 = vmatpush1.bf16.msra.mxu1 %v4359_v36  ;;  %v4388_v1 = vld [vmem:[%s5684_s1 + $0x7f4] ss:$8 sps:$4 sm:$0xff]   ;;  %v4386_v5 = vld [vmem:[%s5684_s1 + $0x7f0] ss:$8 sps:$4 sm:$0xff]  }
  0xf0   :  { %3136 = vmatpush1.bf16.msra.mxu0 %v4362_v37  ;;  %2685 = vmatprep.subr.bf16.mxu1 %v4367_v38  ;;  %v61_v15 = vld [vmem:[%s5683_s0 + $0x158] sm:$0xff] }
  0xf1   :  { %3137 = vmatprep.subr.bf16.mxu0 %v4370_v39  ;;  %v57_v16 = vld [vmem:[%s5683_s0 + $0x138] sm:$0xff]  ;;  %v3433_v20 = vcombine.high %v53_v14, %v61_v15  ;;  %v3432_v26 = vcombine.low %v53_v14, %v61_v15 }
  0xf2   :  { %2641 = vmatmul.mubr.bf16.gmra.mrb[24].mxu1 %v3494_v41  ;;  %v65_v17 = vld [vmem:[%s5683_s0 + $0x178] sm:$0xff] }
  0xf3   :  { %3093 = vmatmul.mubr.bf16.gmra.mrb[24].mxu0 %v3502_v42  ;;  %2686 = vmatpush1.bf16.msra.mxu1 %v4365_v46  ;;  %v3441_v21 = vcombine.high %v57_v16, %v65_v17  ;;  %v69_v22 = vld [vmem:[%s5683_s0 + $0x198] sm:$0xff]  ;;  %v3440_v27 = vcombine.low %v57_v16, %v65_v17 }
  0xf4   :  { %3138 = vmatpush1.bf16.msra.mxu0 %v4368_v47  ;;  %2687 = vmatprep.subr.bf16.mxu1 %v4373_v48  ;;  %v77_v23 = vld [vmem:[%s5683_s0 + $0x1d8] sm:$0xff] }
  0xf5   :  { %3139 = vmatprep.subr.bf16.mxu0 %v4376_v49  ;;  %2650 = vmatprep.mubr.bf16.mxu1 %v3511_v50  ;;  %v73_v24 = vld [vmem:[%s5683_s0 + $0x1b8] sm:$0xff]  ;;  %v3449_v28 = vcombine.high %v69_v22, %v77_v23  ;;  %v3448_v34 = vcombine.low %v69_v22, %v77_v23 }
  0xf6   :  { %3102 = vmatprep.mubr.bf16.mxu0 %v3519_v51  ;;  %v81_v25 = vld [vmem:[%s5683_s0 + $0x1f8] sm:$0xff] }
  0xf7   :  { %2688 = vmatpush1.bf16.msra.mxu1 %v4371_v52  ;;  %v3457_v29 = vcombine.high %v73_v24, %v81_v25  ;;  %v85_v30 = vld [vmem:[%s5683_s0 + $0x218] sm:$0xff]  ;;  %v3456_v35 = vcombine.low %v73_v24, %v81_v25 }
  0xf8   :  { %3140 = vmatpush1.bf16.msra.mxu0 %v4374_v53  ;;  %2689 = vmatprep.subr.bf16.mxu1 %v4379_v54  ;;  %v93_v31 = vld [vmem:[%s5683_s0 + $0x258] sm:$0xff] }
  0xf9   :  { %3141 = vmatprep.subr.bf16.mxu0 %v4382_v55  ;;  %v89_v32 = vld [vmem:[%s5683_s0 + $0x238] sm:$0xff]  ;;  %v3465_v36 = vcombine.high %v85_v30, %v93_v31  ;;  %v3464_v42 = vcombine.low %v85_v30, %v93_v31 }
  0xfa   :  { %2651 = vmatmul.mubr.bf16.gmra.mrb[28].mxu1 %v3510_v57  ;;  %v97_v33 = vld [vmem:[%s5683_s0 + $0x278] sm:$0xff] }
  0xfb   :  { %3103 = vmatmul.mubr.bf16.gmra.mrb[28].mxu0 %v3518_v58  ;;  %2690 = vmatpush1.bf16.msra.mxu1 %v4377_v62  ;;  %v3473_v37 = vcombine.high %v89_v32, %v97_v33  ;;  %v101_v38 = vld [vmem:[%s5683_s0 + $0x298] sm:$0xff]  ;;  %v3472_v43 = vcombine.low %v89_v32, %v97_v33 }
  0xfc   :  { %3142 = vmatpush1.bf16.msra.mxu0 %v4380_v63  ;;  %2691 = vmatprep.subr.bf16.mxu1 %v4385_v0  ;;  %v109_v39 = vld [vmem:[%s5683_s0 + $0x2d8] sm:$0xff]  ;;  %v3228_v0 = vlaneseq }
  0xfd   :  { %3143 = vmatprep.subr.bf16.mxu0 %v4388_v1  ;;  %2693 = vmatprep.mubr.bf16.mxu1 %v3401_v2  ;;  %v105_v40 = vld [vmem:[%s5683_s0 + $0x2b8] sm:$0xff]  ;;  %v3481_v44 = vcombine.high %v101_v38, %v109_v39  ;;  %v3480_v50 = vcombine.low %v101_v38, %v109_v39 }
  0xfe   :  { %3145 = vmatprep.mubr.bf16.mxu0 %v3409_v3  ;;  %v113_v41 = vld [vmem:[%s5683_s0 + $0x2f8] sm:$0xff]  ;;  %v3229_v1 = vshrl.u32 %v3228_v0, 7  ;;  %v3226_v3 = vld [vmem:[%s5685_s2] sm:$0x3]  ;;  %s4413_s2 = smov [#allocation2]  }
  0xff   :  { %2692 = vmatpush1.bf16.msra.mxu1 %v4383_v4  ;;  %v3489_v45 = vcombine.high %v105_v40, %v113_v41  ;;  %v117_v46 = vld [vmem:[%s5683_s0 + $0x318] sm:$0xff]  ;;  %v3488_v51 = vcombine.low %v105_v40, %v113_v41 }
 0x100   :  { %3144 = vmatpush1.bf16.msra.mxu0 %v4386_v5  ;;  %v125_v47 = vld [vmem:[%s5683_s0 + $0x358] sm:$0xff]  ;;  %v3230_v2 = vsub.s32 0, %v3229_v1  ;;  %v3234_v4 = vsub.s32 1, %v3229_v1  ;;  %v3270_v5 = vld [vmem:[%s5686_s3] sm:$0x3]  ;;  %s3383_s3 = sshll.u32 %s4413_s2, 4  ;;  %s3384_s3 = int_to_ptr.vmem [resolvable:$true] %s3383_s3 }
 0x101   :  { %v121_v48 = vld [vmem:[%s5683_s0 + $0x338] sm:$0xff]  ;;  %v3497_v52 = vcombine.high %v117_v46, %v125_v47  ;;  %v3496_v58 = vcombine.low %v117_v46, %v125_v47  ;;  %s4389_s30 = scalar_lea.vmem %s3384_s3, 4096  ;;  %p4394_p1 = scmp.lt.s32.totalorder %s3384_s3, %s3384_s3 }
 0x102   :  { %2694 = vmatmul.mubr.bf16.vlgmr.msra.gmra.mrb[0].mxu1 %v3400_v10  ;;  %v129_v49 = vld [vmem:[%s5683_s0 + $0x378] sm:$0xff]  ;;  %v5599_v6 = vrot.slane %v3226_v3, %v3230_v2  ;;  %v5601_v9 = vrot.slane %v3226_v3, %v3234_v4  ;;  %v5605_v15 = vrot.slane %v3270_v5, %v3234_v4  ;;  %p4390_p0 = scmp.ne.s32.totalorder %s3384_s3, %s4389_s30  ;;  %p4395_p2 = scmp.lt.s32.totalorder %s4389_s30, %s4389_s30 }
 0x103   :  { %3146 = vmatmul.mubr.bf16.vlgmr.msra.gmra.mrb[0].mxu0 %v3408_v11  ;;  %2703 = vmatprep.mubr.bf16.mxu1 %v3417_v12  ;;  %v3505_v53 = vcombine.high %v121_v48, %v129_v49  ;;  %v133_v54 = vld [vmem:[%s5683_s0 + $0x398] sm:$0xff]  ;;  %v3504_v59 = vcombine.low %v121_v48, %v129_v49  ;;  %v5603_v11 = vrot.slane %v3270_v5, %v3230_v2 }
 0x104   :  { %3155 = vmatprep.mubr.bf16.mxu0 %v3425_v13  ;;  %v141_v55 = vld [vmem:[%s5683_s0 + $0x3d8] sm:$0xff]  ;;  %p4396_p3 = por %p4395_p2, %p4394_p1 }
 0x105   :  { %v137_v56 = vld [vmem:[%s5683_s0 + $0x3b8] sm:$0xff]  ;;  %v3513_v60 = vcombine.high %v133_v54, %v141_v55  ;;  %v3512_v62 = vcombine.low %v133_v54, %v141_v55 }
 0x106   :  { %v145_v57 = vld [vmem:[%s5683_s0 + $0x3f8] sm:$0xff]  ;;  %p4397_p4 = pnand %p4396_p3, %p4390_p0 }
 0x107   :  { %v3521_v61 = vcombine.high %v137_v56, %v145_v57  ;;  %v3520_v63 = vcombine.low %v137_v56, %v145_v57 }
 0x10a   :  { %2704 = vmatmul.mubr.bf16.gmra.mrb[4].mxu1 %v3416_v18 }
 0x10b   :  { %3156 = vmatmul.mubr.bf16.gmra.mrb[4].mxu0 %v3424_v19  ;;  %2713 = vmatprep.mubr.bf16.mxu1 %v3433_v20 }
 0x10c   :  { %3165 = vmatprep.mubr.bf16.mxu0 %v3441_v21 }
 0x112   :  { %2714 = vmatmul.mubr.bf16.gmra.mrb[8].mxu1 %v3432_v26 }
 0x113   :  { %3166 = vmatmul.mubr.bf16.gmra.mrb[8].mxu0 %v3440_v27  ;;  %2723 = vmatprep.mubr.bf16.mxu1 %v3449_v28 }
 0x114   :  { %3175 = vmatprep.mubr.bf16.mxu0 %v3457_v29 }
 0x11a   :  { %2724 = vmatmul.mubr.bf16.gmra.mrb[12].mxu1 %v3448_v34 }
 0x11b   :  { %3176 = vmatmul.mubr.bf16.gmra.mrb[12].mxu0 %v3456_v35  ;;  %2733 = vmatprep.mubr.bf16.mxu1 %v3465_v36 }
 0x11c   :  { %3185 = vmatprep.mubr.bf16.mxu0 %v3473_v37 }
 0x122   :  { %2734 = vmatmul.mubr.bf16.gmra.mrb[16].mxu1 %v3464_v42 }
 0x123   :  { %3186 = vmatmul.mubr.bf16.gmra.mrb[16].mxu0 %v3472_v43  ;;  %2743 = vmatprep.mubr.bf16.mxu1 %v3481_v44 }
 0x124   :  { %3195 = vmatprep.mubr.bf16.mxu0 %v3489_v45 }
 0x12a   :  { %2744 = vmatmul.mubr.bf16.gmra.mrb[20].mxu1 %v3480_v50 }
 0x12b   :  { %3196 = vmatmul.mubr.bf16.gmra.mrb[20].mxu0 %v3488_v51  ;;  %2753 = vmatprep.mubr.bf16.mxu1 %v3497_v52 }
 0x12c   :  { %3205 = vmatprep.mubr.bf16.mxu0 %v3505_v53 }
 0x132   :  { %2754 = vmatmul.mubr.bf16.gmra.mrb[24].mxu1 %v3496_v58 }
 0x133   :  { %3206 = vmatmul.mubr.bf16.gmra.mrb[24].mxu0 %v3504_v59  ;;  %2763 = vmatprep.mubr.bf16.mxu1 %v3513_v60 }
 0x134   :  { %3215 = vmatprep.mubr.bf16.mxu0 %v3521_v61 }
 0x13a   :  { %2764 = vmatmul.mubr.bf16.gmra.mrb[28].mxu1 %v3512_v62 }
 0x13b   :  { %3216 = vmatmul.mubr.bf16.gmra.mrb[28].mxu0 %v3520_v63 }
 0x1d5   :  { %v2695_v7 = vpop.f32.mrb[0].mxu1 }
 0x1d6   :  { %v3147_v8 = vpop.f32.mrb[0].mxu0  ;;  %v2697_v12 = vpop.f32.mrb[1].mxu1 }
 0x1d7   :  { %v3778_v10 = vadd.f32 %v3147_v8, %v2695_v7  ;;  %v3149_v13 = vpop.f32.mrb[1].mxu0  ;;  %v2699_v16 = vpop.f32.mrb[2].mxu1 }
 0x1d8   :  { %v3779_v14 = vadd.f32 %v3149_v13, %v2697_v12  ;;  %v3151_v17 = vpop.f32.mrb[2].mxu0  ;;  %v2701_v20 = vpop.f32.mrb[3].mxu1 }
 0x1d9   :  { %v3238_v18 = vmul.f32 %v3778_v10, %v5599_v6  ;;  %v3780_v19 = vadd.f32 %v3151_v17, %v2699_v16  ;;  %v3153_v21 = vpop.f32.mrb[3].mxu0 }
 0x1da   :  { %v3239_v22 = vmul.f32 %v3779_v14, %v5601_v9  ;;  %v3781_v23 = vadd.f32 %v3153_v21, %v2701_v20 }
 0x1db   :  { %v3282_v24 = vadd.f32 %v5603_v11, %v3238_v18  ;;  %v3240_v25 = vmul.f32 %v3780_v19, %v5599_v6 }
 0x1dc   :  { %v3283_v26 = vadd.f32 %v5605_v15, %v3239_v22  ;;  %v3241_v27 = vmul.f32 %v3781_v23, %v5601_v9 }
 0x1dd   :  { %v3314_v28 = vmax.f32 %v3282_v24, 0.0  ;;  %v3284_v29 = vadd.f32 %v5603_v11, %v3240_v25  ;;  %v2705_v32 = vpop.f32.mrb[4].mxu1 }
 0x1de   :  { %v3315_v30 = vmax.f32 %v3283_v26, 0.0  ;;  %v3285_v31 = vadd.f32 %v5605_v15, %v3241_v27  ;;  %v3157_v33 = vpop.f32.mrb[4].mxu0  ;;  %v2707_v36 = vpop.f32.mrb[5].mxu1 }
 0x1df   :  { %3346 = vst [vmem:[#allocation2] sm:$0xff] %v3314_v28  ;;  %v3316_v34 = vmax.f32 %v3284_v29, 0.0  ;;  %v3782_v35 = vadd.f32 %v3157_v33, %v2705_v32  ;;  %v3159_v37 = vpop.f32.mrb[5].mxu0  ;;  %v2709_v40 = vpop.f32.mrb[6].mxu1 }
 0x1e0   :  { %3347 = vst [vmem:[#allocation2 + $0x8] sm:$0xff] %v3315_v30  ;;  %v3317_v38 = vmax.f32 %v3285_v31, 0.0  ;;  %v3783_v39 = vadd.f32 %v3159_v37, %v2707_v36  ;;  %v3161_v41 = vpop.f32.mrb[6].mxu0  ;;  %v2711_v44 = vpop.f32.mrb[7].mxu1 }
 0x1e1   :  { %3348 = vst [vmem:[#allocation2 + $0x10] sm:$0xff] %v3316_v34  ;;  %v3242_v42 = vmul.f32 %v3782_v35, %v5599_v6  ;;  %v3784_v43 = vadd.f32 %v3161_v41, %v2709_v40  ;;  %v3163_v45 = vpop.f32.mrb[7].mxu0 }
 0x1e2   :  { %3349 = vst [vmem:[#allocation2 + $0x18] sm:$0xff] %v3317_v38  ;;  %v3243_v46 = vmul.f32 %v3783_v39, %v5601_v9  ;;  %v3785_v47 = vadd.f32 %v3163_v45, %v2711_v44 }
 0x1e3   :  { %v3286_v48 = vadd.f32 %v5603_v11, %v3242_v42  ;;  %v3244_v49 = vmul.f32 %v3784_v43, %v5599_v6 }
 0x1e4   :  { %v3287_v50 = vadd.f32 %v5605_v15, %v3243_v46  ;;  %v3245_v51 = vmul.f32 %v3785_v47, %v5601_v9 }
 0x1e5   :  { %v3318_v52 = vmax.f32 %v3286_v48, 0.0  ;;  %v3288_v53 = vadd.f32 %v5603_v11, %v3244_v49  ;;  %v2715_v56 = vpop.f32.mrb[8].mxu1 }
 0x1e6   :  { %v3319_v54 = vmax.f32 %v3287_v50, 0.0  ;;  %v3289_v55 = vadd.f32 %v5605_v15, %v3245_v51  ;;  %v3167_v57 = vpop.f32.mrb[8].mxu0  ;;  %v2717_v60 = vpop.f32.mrb[9].mxu1 }
 0x1e7   :  { %3350 = vst [vmem:[#allocation2 + $0x20] sm:$0xff] %v3318_v52  ;;  %v3320_v58 = vmax.f32 %v3288_v53, 0.0  ;;  %v3786_v59 = vadd.f32 %v3167_v57, %v2715_v56  ;;  %v3169_v61 = vpop.f32.mrb[9].mxu0  ;;  %v2719_v0 = vpop.f32.mrb[10].mxu1 }
 0x1e8   :  { %3351 = vst [vmem:[#allocation2 + $0x28] sm:$0xff] %v3319_v54  ;;  %v3321_v62 = vmax.f32 %v3289_v55, 0.0  ;;  %v3787_v63 = vadd.f32 %v3169_v61, %v2717_v60  ;;  %v3171_v1 = vpop.f32.mrb[10].mxu0  ;;  %v2721_v4 = vpop.f32.mrb[11].mxu1 }
 0x1e9   :  { %3352 = vst [vmem:[#allocation2 + $0x30] sm:$0xff] %v3320_v58  ;;  %v3246_v2 = vmul.f32 %v3786_v59, %v5599_v6  ;;  %v3788_v3 = vadd.f32 %v3171_v1, %v2719_v0  ;;  %v3173_v5 = vpop.f32.mrb[11].mxu0 }
 0x1ea   :  { %3353 = vst [vmem:[#allocation2 + $0x38] sm:$0xff] %v3321_v62  ;;  %v3247_v7 = vmul.f32 %v3787_v63, %v5601_v9  ;;  %v3789_v8 = vadd.f32 %v3173_v5, %v2721_v4 }
 0x1eb   :  { %v3290_v10 = vadd.f32 %v5603_v11, %v3246_v2  ;;  %v3248_v12 = vmul.f32 %v3788_v3, %v5599_v6 }
 0x1ec   :  { %v3291_v13 = vadd.f32 %v5605_v15, %v3247_v7  ;;  %v3249_v14 = vmul.f32 %v3789_v8, %v5601_v9 }
 0x1ed   :  { %v3322_v16 = vmax.f32 %v3290_v10, 0.0  ;;  %v3292_v17 = vadd.f32 %v5603_v11, %v3248_v12  ;;  %v2725_v20 = vpop.f32.mrb[12].mxu1 }
 0x1ee   :  { %v3323_v18 = vmax.f32 %v3291_v13, 0.0  ;;  %v3293_v19 = vadd.f32 %v5605_v15, %v3249_v14  ;;  %v3177_v21 = vpop.f32.mrb[12].mxu0  ;;  %v2727_v24 = vpop.f32.mrb[13].mxu1 }
 0x1ef   :  { %3354 = vst [vmem:[#allocation2 + $0x40] sm:$0xff] %v3322_v16  ;;  %v3324_v22 = vmax.f32 %v3292_v17, 0.0  ;;  %v3790_v23 = vadd.f32 %v3177_v21, %v2725_v20  ;;  %v3179_v25 = vpop.f32.mrb[13].mxu0  ;;  %v2729_v28 = vpop.f32.mrb[14].mxu1 }
 0x1f0   :  { %3355 = vst [vmem:[#allocation2 + $0x48] sm:$0xff] %v3323_v18  ;;  %v3325_v26 = vmax.f32 %v3293_v19, 0.0  ;;  %v3791_v27 = vadd.f32 %v3179_v25, %v2727_v24  ;;  %v3181_v29 = vpop.f32.mrb[14].mxu0  ;;  %v2731_v32 = vpop.f32.mrb[15].mxu1 }
 0x1f1   :  { %3356 = vst [vmem:[#allocation2 + $0x50] sm:$0xff] %v3324_v22  ;;  %v3250_v30 = vmul.f32 %v3790_v23, %v5599_v6  ;;  %v3792_v31 = vadd.f32 %v3181_v29, %v2729_v28  ;;  %v3183_v33 = vpop.f32.mrb[15].mxu0 }
 0x1f2   :  { %3357 = vst [vmem:[#allocation2 + $0x58] sm:$0xff] %v3325_v26  ;;  %v3251_v34 = vmul.f32 %v3791_v27, %v5601_v9  ;;  %v3793_v35 = vadd.f32 %v3183_v33, %v2731_v32 }
 0x1f3   :  { %v3294_v36 = vadd.f32 %v5603_v11, %v3250_v30  ;;  %v3252_v37 = vmul.f32 %v3792_v31, %v5599_v6 }
 0x1f4   :  { %v3295_v38 = vadd.f32 %v5605_v15, %v3251_v34  ;;  %v3253_v39 = vmul.f32 %v3793_v35, %v5601_v9 }
 0x1f5   :  { %v3326_v40 = vmax.f32 %v3294_v36, 0.0  ;;  %v3296_v41 = vadd.f32 %v5603_v11, %v3252_v37  ;;  %v2735_v44 = vpop.f32.mrb[16].mxu1 }
 0x1f6   :  { %v3327_v42 = vmax.f32 %v3295_v38, 0.0  ;;  %v3297_v43 = vadd.f32 %v5605_v15, %v3253_v39  ;;  %v3187_v45 = vpop.f32.mrb[16].mxu0  ;;  %v2737_v48 = vpop.f32.mrb[17].mxu1 }
 0x1f7   :  { %3358 = vst [vmem:[#allocation2 + $0x60] sm:$0xff] %v3326_v40  ;;  %v3328_v46 = vmax.f32 %v3296_v41, 0.0  ;;  %v3794_v47 = vadd.f32 %v3187_v45, %v2735_v44  ;;  %v3189_v49 = vpop.f32.mrb[17].mxu0  ;;  %v2739_v52 = vpop.f32.mrb[18].mxu1 }
 0x1f8   :  { %3359 = vst [vmem:[#allocation2 + $0x68] sm:$0xff] %v3327_v42  ;;  %v3329_v50 = vmax.f32 %v3297_v43, 0.0  ;;  %v3795_v51 = vadd.f32 %v3189_v49, %v2737_v48  ;;  %v3191_v53 = vpop.f32.mrb[18].mxu0  ;;  %v2741_v56 = vpop.f32.mrb[19].mxu1 }
 0x1f9   :  { %3360 = vst [vmem:[#allocation2 + $0x70] sm:$0xff] %v3328_v46  ;;  %v3254_v54 = vmul.f32 %v3794_v47, %v5599_v6  ;;  %v3796_v55 = vadd.f32 %v3191_v53, %v2739_v52  ;;  %v3193_v57 = vpop.f32.mrb[19].mxu0 }
 0x1fa   :  { %3361 = vst [vmem:[#allocation2 + $0x78] sm:$0xff] %v3329_v50  ;;  %v3255_v58 = vmul.f32 %v3795_v51, %v5601_v9  ;;  %v3797_v59 = vadd.f32 %v3193_v57, %v2741_v56 }
 0x1fb   :  { %v3298_v60 = vadd.f32 %v5603_v11, %v3254_v54  ;;  %v3256_v61 = vmul.f32 %v3796_v55, %v5599_v6 }
 0x1fc   :  { %v3299_v62 = vadd.f32 %v5605_v15, %v3255_v58  ;;  %v3257_v63 = vmul.f32 %v3797_v59, %v5601_v9 }
 0x1fd   :  { %v3330_v0 = vmax.f32 %v3298_v60, 0.0  ;;  %v3300_v1 = vadd.f32 %v5603_v11, %v3256_v61  ;;  %v2745_v4 = vpop.f32.mrb[20].mxu1 }
 0x1fe   :  { %v3331_v2 = vmax.f32 %v3299_v62, 0.0  ;;  %v3301_v3 = vadd.f32 %v5605_v15, %v3257_v63  ;;  %v3197_v5 = vpop.f32.mrb[20].mxu0  ;;  %v2747_v10 = vpop.f32.mrb[21].mxu1 }
 0x1ff   :  { %3362 = vst [vmem:[#allocation2 + $0x80] sm:$0xff] %v3330_v0  ;;  %v3332_v7 = vmax.f32 %v3300_v1, 0.0  ;;  %v3798_v8 = vadd.f32 %v3197_v5, %v2745_v4  ;;  %v3199_v12 = vpop.f32.mrb[21].mxu0  ;;  %v2749_v16 = vpop.f32.mrb[22].mxu1 }
 0x200   :  { %3363 = vst [vmem:[#allocation2 + $0x88] sm:$0xff] %v3331_v2  ;;  %v3333_v13 = vmax.f32 %v3301_v3, 0.0  ;;  %v3799_v14 = vadd.f32 %v3199_v12, %v2747_v10  ;;  %v3201_v17 = vpop.f32.mrb[22].mxu0  ;;  %v2751_v20 = vpop.f32.mrb[23].mxu1 }
 0x201   :  { %3364 = vst [vmem:[#allocation2 + $0x90] sm:$0xff] %v3332_v7  ;;  %v3258_v18 = vmul.f32 %v3798_v8, %v5599_v6  ;;  %v3800_v19 = vadd.f32 %v3201_v17, %v2749_v16  ;;  %v3203_v21 = vpop.f32.mrb[23].mxu0 }
 0x202   :  { %3365 = vst [vmem:[#allocation2 + $0x98] sm:$0xff] %v3333_v13  ;;  %v3259_v22 = vmul.f32 %v3799_v14, %v5601_v9  ;;  %v3801_v23 = vadd.f32 %v3203_v21, %v2751_v20 }
 0x203   :  { %v3302_v24 = vadd.f32 %v5603_v11, %v3258_v18  ;;  %v3260_v25 = vmul.f32 %v3800_v19, %v5599_v6 }
 0x204   :  { %v3303_v26 = vadd.f32 %v5605_v15, %v3259_v22  ;;  %v3261_v27 = vmul.f32 %v3801_v23, %v5601_v9 }
 0x205   :  { %v3334_v28 = vmax.f32 %v3302_v24, 0.0  ;;  %v3304_v29 = vadd.f32 %v5603_v11, %v3260_v25  ;;  %v2755_v32 = vpop.f32.mrb[24].mxu1 }
 0x206   :  { %v3335_v30 = vmax.f32 %v3303_v26, 0.0  ;;  %v3305_v31 = vadd.f32 %v5605_v15, %v3261_v27  ;;  %v3207_v33 = vpop.f32.mrb[24].mxu0  ;;  %v2757_v36 = vpop.f32.mrb[25].mxu1 }
 0x207   :  { %3366 = vst [vmem:[#allocation2 + $0xa0] sm:$0xff] %v3334_v28  ;;  %v3336_v34 = vmax.f32 %v3304_v29, 0.0  ;;  %v3802_v35 = vadd.f32 %v3207_v33, %v2755_v32  ;;  %v3209_v37 = vpop.f32.mrb[25].mxu0  ;;  %v2759_v40 = vpop.f32.mrb[26].mxu1 }
 0x208   :  { %3367 = vst [vmem:[#allocation2 + $0xa8] sm:$0xff] %v3335_v30  ;;  %v3337_v38 = vmax.f32 %v3305_v31, 0.0  ;;  %v3803_v39 = vadd.f32 %v3209_v37, %v2757_v36  ;;  %v3211_v41 = vpop.f32.mrb[26].mxu0  ;;  %v2761_v44 = vpop.f32.mrb[27].mxu1 }
 0x209   :  { %3368 = vst [vmem:[#allocation2 + $0xb0] sm:$0xff] %v3336_v34  ;;  %v3262_v42 = vmul.f32 %v3802_v35, %v5599_v6  ;;  %v3804_v43 = vadd.f32 %v3211_v41, %v2759_v40  ;;  %v3213_v45 = vpop.f32.mrb[27].mxu0 }
 0x20a   :  { %3369 = vst [vmem:[#allocation2 + $0xb8] sm:$0xff] %v3337_v38  ;;  %v3263_v46 = vmul.f32 %v3803_v39, %v5601_v9  ;;  %v3805_v47 = vadd.f32 %v3213_v45, %v2761_v44 }
 0x20b   :  { %v3306_v48 = vadd.f32 %v5603_v11, %v3262_v42  ;;  %v3264_v49 = vmul.f32 %v3804_v43, %v5599_v6 }
 0x20c   :  { %v3307_v50 = vadd.f32 %v5605_v15, %v3263_v46  ;;  %v3265_v51 = vmul.f32 %v3805_v47, %v5601_v9 }
 0x20d   :  { %v3338_v52 = vmax.f32 %v3306_v48, 0.0  ;;  %v3308_v53 = vadd.f32 %v5603_v11, %v3264_v49  ;;  %v2765_v56 = vpop.f32.mrb[28].mxu1 }
 0x20e   :  { %v3339_v54 = vmax.f32 %v3307_v50, 0.0  ;;  %v3309_v55 = vadd.f32 %v5605_v15, %v3265_v51  ;;  %v3217_v57 = vpop.f32.mrb[28].mxu0  ;;  %v2767_v60 = vpop.f32.mrb[29].mxu1 }
 0x20f   :  { %3370 = vst [vmem:[#allocation2 + $0xc0] sm:$0xff] %v3338_v52  ;;  %v3340_v58 = vmax.f32 %v3308_v53, 0.0  ;;  %v3806_v59 = vadd.f32 %v3217_v57, %v2765_v56  ;;  %v3219_v61 = vpop.f32.mrb[29].mxu0  ;;  %v2769_v0 = vpop.f32.mrb[30].mxu1 }
 0x210   :  { %3371 = vst [vmem:[#allocation2 + $0xc8] sm:$0xff] %v3339_v54  ;;  %v3341_v62 = vmax.f32 %v3309_v55, 0.0  ;;  %v3807_v63 = vadd.f32 %v3219_v61, %v2767_v60  ;;  %v3221_v1 = vpop.f32.mrb[30].mxu0  ;;  %v2771_v4 = vpop.f32.mrb[31].mxu1 }
 0x211   :  { %3372 = vst [vmem:[#allocation2 + $0xd0] sm:$0xff] %v3340_v58  ;;  %v3266_v2 = vmul.f32 %v3806_v59, %v5599_v6  ;;  %v3808_v3 = vadd.f32 %v3221_v1, %v2769_v0  ;;  %v3223_v5 = vpop.f32.mrb[31].mxu0 }
 0x212   :  { %3373 = vst [vmem:[#allocation2 + $0xd8] sm:$0xff] %v3341_v62  ;;  %v3267_v7 = vmul.f32 %v3807_v63, %v5601_v9  ;;  %v3809_v8 = vadd.f32 %v3223_v5, %v2771_v4 }
 0x213   :  { %v3310_v10 = vadd.f32 %v5603_v11, %v3266_v2  ;;  %v3268_v12 = vmul.f32 %v3808_v3, %v5599_v6 }
 0x214   :  { %v3311_v13 = vadd.f32 %v5605_v15, %v3267_v7  ;;  %v3269_v14 = vmul.f32 %v3809_v8, %v5601_v9 }
 0x215   :  { %v3342_v16 = vmax.f32 %v3310_v10, 0.0  ;;  %v3312_v17 = vadd.f32 %v5603_v11, %v3268_v12 }
 0x216   :  { %v3343_v18 = vmax.f32 %v3311_v13, 0.0  ;;  %v3313_v19 = vadd.f32 %v5605_v15, %v3269_v14 }
 0x217   :  { %3374 = vst [vmem:[#allocation2 + $0xe0] sm:$0xff] %v3342_v16  ;;  %v3344_v20 = vmax.f32 %v3312_v17, 0.0 }
 0x218   :  { %3375 = vst [vmem:[#allocation2 + $0xe8] sm:$0xff] %v3343_v18  ;;  %v3345_v21 = vmax.f32 %v3313_v19, 0.0 }
 0x219   :  { %3376 = vst [vmem:[#allocation2 + $0xf0] sm:$0xff] %v3344_v20 }
 0x21a   :  { %3377 = vst [vmem:[#allocation2 + $0xf8] sm:$0xff] %v3345_v21 }
 0x21b   :  { %4400 = shalt.err (!%p4397_p4)
}
 0x21c   :  { %s4401_s1 = scalar_lea.hbm %s5687_s4, 4096 }
 0x21d   :  { %p4402_p5 = scmp.ne.s32.totalorder %s5687_s4, %s4401_s1  ;;  %p4405_p6 = scmp.lt.u32.totalorder %s4401_s1, %s5687_s4 }
 0x21f   :  { %p4407_p7 = pnand %p4405_p6, %p4402_p5 }
 0x221   :  { %4410 = shalt.err (!%p4407_p7)
}
 0x222   :  { %s4414_s11 = smov 256   ;;  %s4415_s12 = smov 16  }
 0x223   :  { %3389 = dma.vmem_to_hbm [thread:$0]  %s3384_s3, 4096, %s5687_s4, [#allocation3], %s4414_s11, %s4414_s11, %s4415_s12  }
 0x224   :  { %4411 = dma.done.wait [#allocation3], 4096  }
 0x225   :  { %4412 = vsyncadd [#allocation3], 4294963200 }
 0x226   :  { %3393 = vsyncpa [#allocation3], 1 }

</bundles_post_ra>
